<compile_context>
chip_gen: v7x
topology: tpu7x:2x2x1
jax: 0.10.0
libtpu: 0.0.40
codegen_flags: <defaults>
</compile_context>

<pallas_src>
import functools

import jax
import jax.numpy as jnp
from jax.experimental import pallas as pl
from jax.experimental.pallas import tpu as pltpu

EPS = 1e-5
DIM_SCALE = 4
EXPAND = DIM_SCALE * DIM_SCALE  # 16

_VMEM_TARGET = 22 * 1024 * 1024     # budget for blocks + big f32 temporaries
_WEIGHT_BUDGET = 8 * 1024 * 1024    # budget for the double-buffered weight block
_VMEM_LIMIT = 32 * 1024 * 1024      # scoped VMEM limit (safe on v5e/v6e/v7x)


def _round_up(x, m):
    return (x + m - 1) // m * m


def _choose_tiling(n_tok, c, x_item, w_item, out_item):
    """Pick (token tile TM, column tile TN, segments-per-tile) from a VMEM budget."""
    # Column tiling in whole C-segments; only needed when the weight is large (big dim).
    segs = EXPAND
    while segs > 1 and 2 * c * segs * c * w_item > _WEIGHT_BUDGET:
        nxt = segs // 2
        if (nxt * c) % 128 != 0:   # keep the output block lane-aligned when not full width
            break
        segs = nxt
    tn = segs * c
    w_bytes = 2 * c * tn * w_item
    # Per-token VMEM: double-buffered x & out blocks + ~4 f32 (TM, TN) temporaries
    # (y, y*y, broadcast scale, broadcast shift).
    per_tok = 2 * (c * x_item + tn * out_item) + 4 * tn * 4
    tm = (_VMEM_TARGET - w_bytes) // per_tok
    tm = int(max(8, min(1024, (tm // 8) * 8)))
    tm = min(tm, _round_up(n_tok, 8))
    return tm, tn, segs


def _expand_norm_kernel(x_ref, w_ref, b_ref, a_ref, eg_ref, o_ref):
    # x_ref : (TM, C)      matmul dtype (f32 or bf16)
    # w_ref : (C, TN)      matmul dtype
    # b_ref : (1, TN)      f32  beta tiled across the segments
    # a_ref : (TN, S)      f32  block-indicator (segment-sum matrix), S = TN // C
    # eg_ref: (S, TN)      f32  broadcast expander with gamma folded in
    # o_ref : (TM, TN)     output dtype
    c = x_ref.shape[1]

    # Linear(dim -> 16*dim), no bias.  MXU matmul with f32 accumulation.
    y = jnp.dot(x_ref[...], w_ref[...], preferred_element_type=jnp.float32)  # (TM, TN)

    # Per-segment LayerNorm statistics, kept lane-dense via small MXU matmuls.
    a = a_ref[...]
    seg_sum = jnp.dot(y, a, preferred_element_type=jnp.float32)       # (TM, S)
    seg_sq = jnp.dot(y * y, a, preferred_element_type=jnp.float32)    # (TM, S)

    inv_c = 1.0 / c
    mean = seg_sum * inv_c
    var = jnp.maximum(seg_sq * inv_c - mean * mean, 0.0)   # one-pass variance, clamped
    inv = jax.lax.rsqrt(var + EPS)                         # (TM, S), EUP

    # Broadcast per-segment (scale, shift) back to (TM, TN); gamma folded into eg.
    eg = eg_ref[...]
    scale_g = jnp.dot(inv, eg, preferred_element_type=jnp.float32)          # inv*gamma
    shift_g = jnp.dot(-mean * inv, eg, preferred_element_type=jnp.float32)  # -mean*inv*gamma

    o_ref[...] = (y * scale_g + shift_g + b_ref[...]).astype(o_ref.dtype)


def prepare_params(w_expand, gamma, beta, *, matmul_dtype=None):
    """One-time parameter prep (hoisted out of the per-call hot path).

    w_expand: PyTorch nn.Linear(dim, 16*dim, bias=False).weight, shape (16*dim, dim).
    Returns (w_t, gamma16, beta16): w_t (dim, 16*dim), gamma/beta tiled to (1, 16*dim) f32.
    """
    c = w_expand.shape[1]
    w_t = jnp.asarray(w_expand).T                       # (C, 16C); HBM transpose done once
    if matmul_dtype is not None:
        w_t = w_t.astype(matmul_dtype)
    gamma16 = jnp.tile(jnp.asarray(gamma, jnp.float32).reshape(1, c), (1, EXPAND))
    beta16 = jnp.tile(jnp.asarray(beta, jnp.float32).reshape(1, c), (1, EXPAND))
    return w_t, gamma16, beta16


@functools.partial(jax.jit, static_argnames=("input_resolution",))
def final_patch_expand_x4(x, w_t, gamma16, beta16, *, input_resolution):
    """x: (B, H*W, C). Params from prepare_params. Returns (B, 16*H*W, C)."""
    B, L, C = x.shape
    H, W = input_resolution
    assert L == H * W, "input feature has wrong size"
    assert w_t.shape == (C, EXPAND * C)

    out_dtype = x.dtype
    mm_dtype = w_t.dtype
    x_flat = x.reshape(B * L, C).astype(mm_dtype)
    n_tok = B * L

    tm, tn, segs = _choose_tiling(
        n_tok, C, jnp.dtype(mm_dtype).itemsize, jnp.dtype(mm_dtype).itemsize,
        jnp.dtype(out_dtype).itemsize)

    # Tiny segment-sum / broadcast matrices (trace-time constant shapes, negligible cost).
    seg_of_col = jnp.arange(tn, dtype=jnp.int32) // C
    a_mat = (seg_of_col[:, None] == jnp.arange(segs, dtype=jnp.int32)[None, :]
             ).astype(jnp.float32)                     # (TN, S) segment indicator
    # Broadcast expander with gamma folded in: eg[s, col] = 1[col in seg s] * gamma[col % C].
    e_gamma = a_mat.T * gamma16[:, :tn]                # (S, TN)
    beta_t = beta16[:, :tn]                            # (1, TN)

    grid = (pl.cdiv(n_tok, tm), (EXPAND * C) // tn)

    out_flat = pl.pallas_call(
        _expand_norm_kernel,
        out_shape=jax.ShapeDtypeStruct((n_tok, EXPAND * C), out_dtype),
        grid=grid,
        in_specs=[
            pl.BlockSpec((tm, C), lambda i, j: (i, 0)),        # x tile
            pl.BlockSpec((C, tn), lambda i, j: (0, j)),        # weight column tile
            pl.BlockSpec((1, tn), lambda i, j: (0, j)),        # beta (tiled 16x)
            pl.BlockSpec((tn, segs), lambda i, j: (0, 0)),     # segment-sum matrix
            pl.BlockSpec((segs, tn), lambda i, j: (0, 0)),     # gamma-folded expander
        ],
        out_specs=pl.BlockSpec((tm, tn), lambda i, j: (i, j)),  # lane-dense output block
        compiler_params=pltpu.CompilerParams(
            dimension_semantics=("parallel", "parallel"),
            vmem_limit_bytes=_VMEM_LIMIT,
        ),
    )(x_flat, w_t, beta_t, a_mat, e_gamma)

    # Free row-major reshape: (B*L, 16C) -> (B, 16*L, C), identical to the module's
    # view/reshape chain.
    return out_flat.reshape(B, L * EXPAND, C)


def _reference(x, w_expand, gamma, beta, input_resolution):
    """Pure-JAX reference mirroring the PyTorch forward literally."""
    H, W = input_resolution
    B, L, C_in = x.shape
    y = x @ w_expand.T                                   # (B, L, 16C)
    B_, L_, C = y.shape
    y = y.reshape(B_, H, W, C)
    y = y.reshape(B_, H * DIM_SCALE, W * DIM_SCALE, C // (DIM_SCALE ** 2))
    y = y.reshape(B_, -1, C_in)
    mean = jnp.mean(y, axis=-1, keepdims=True)
    var = jnp.mean((y - mean) ** 2, axis=-1, keepdims=True)
    return (y - mean) * jax.lax.rsqrt(var + EPS) * gamma + beta


if __name__ == "__main__":
    key = jax.random.PRNGKey(0)
    k_x, k_w = jax.random.split(key)

    # Small shapes consistent with the module: dim=32, input_resolution=(8, 8), B=2
    B, dim = 2, 32
    H = W = 8
    input_resolution = (H, W)

    x = jax.random.normal(k_x, (B, H * W, dim), dtype=jnp.float32)
    # nn.Linear(dim, 16*dim, bias=False): weight shape (16*dim, dim)
    w_expand = jax.random.normal(k_w, (EXPAND * dim, dim), dtype=jnp.float32) * 0.02
    # nn.LayerNorm(dim) default init: weight=1, bias=0
    gamma = jnp.ones((dim,), dtype=jnp.float32)
    beta = jnp.zeros((dim,), dtype=jnp.float32)

    # --- exact f32 path ---
    w_t, g16, b16 = prepare_params(w_expand, gamma, beta)
    out = final_patch_expand_x4(x, w_t, g16, b16, input_resolution=input_resolution)
    out = jax.block_until_ready(out)

    ref = _reference(x, w_expand, gamma, beta, input_resolution)
    assert out.shape == (B, H * W * EXPAND, dim), out.shape
    assert jnp.allclose(out, ref, atol=5e-4, rtol=5e-4), \
        float(jnp.max(jnp.abs(out - ref)))

    # --- bf16-matmul path (perf option: native MXU dtype, halved x/weight traffic) ---
    w_tb, g16b, b16b = prepare_params(w_expand, gamma, beta, matmul_dtype=jnp.bfloat16)
    out_b = final_patch_expand_x4(x, w_tb, g16b, b16b, input_resolution=input_resolution)
    out_b = jax.block_until_ready(out_b)
    ref_b = _reference(x.astype(jnp.bfloat16).astype(jnp.float32),
                       w_expand.astype(jnp.bfloat16).astype(jnp.float32),
                       gamma, beta, input_resolution)
    assert out_b.shape == out.shape
    assert jnp.allclose(out_b, ref_b, atol=2e-2, rtol=2e-2)

    print("KERNEL_OK")
</pallas_src>

<mosaic_0001>
module attributes {stable_mosaic.version = 11 : i64} {
  func.func @_expand_norm_kernel(%arg0: i32, %arg1: i32, %arg2: memref<128x32xf32, #tpu.memory_space<vmem>>, %arg3: memref<32x512xf32, #tpu.memory_space<vmem>>, %arg4: memref<1x512xf32, #tpu.memory_space<vmem>>, %arg5: memref<512x16xf32, #tpu.memory_space<vmem>>, %arg6: memref<16x512xf32, #tpu.memory_space<vmem>>, %arg7: memref<128x512xf32, #tpu.memory_space<vmem>>) attributes {dimension_semantics = [#tpu.dimension_semantics<parallel>, #tpu.dimension_semantics<parallel>], iteration_bounds = array<i64: 1, 1>, scalar_prefetch = 0 : i64, scratch_operands = 0 : i64, tpu.core_type = #tpu.core_type<tc>, window_params = [{transform_indices = @transform_0, window_bounds = array<i64: 128, 32>}, {transform_indices = @transform_1, window_bounds = array<i64: 32, 512>}, {transform_indices = @transform_2, window_bounds = array<i64: 1, 512>}, {pipeline_mode = #tpu.pipeline_mode<synchronous>, transform_indices = @transform_3, window_bounds = array<i64: 512, 16>}, {pipeline_mode = #tpu.pipeline_mode<synchronous>, transform_indices = @transform_4, window_bounds = array<i64: 16, 512>}, {transform_indices = @transform_5, window_bounds = array<i64: 128, 512>}]} {
    %c0 = arith.constant 0 : index
    %c0_0 = arith.constant 0 : index
    %0 = vector.load %arg2[%c0, %c0_0] : memref<128x32xf32, #tpu.memory_space<vmem>>, vector<128x32xf32>
    %c0_1 = arith.constant 0 : index
    %c0_2 = arith.constant 0 : index
    %1 = vector.load %arg3[%c0_1, %c0_2] : memref<32x512xf32, #tpu.memory_space<vmem>>, vector<32x512xf32>
    %cst = arith.constant dense<0.000000e+00> : vector<128x512xf32>
    %2 = tpu.matmul %0, %1, %cst {dimension_numbers = #tpu.dot_dimension_numbers<[1], [0], [0], [1], [0, 0, 1, 1], [], []>} : vector<128x32xf32>, vector<32x512xf32>, vector<128x512xf32> -> vector<128x512xf32>
    %c0_3 = arith.constant 0 : index
    %c0_4 = arith.constant 0 : index
    %3 = vector.load %arg5[%c0_3, %c0_4] : memref<512x16xf32, #tpu.memory_space<vmem>>, vector<512x16xf32>
    %cst_5 = arith.constant dense<0.000000e+00> : vector<128x16xf32>
    %4 = tpu.matmul %2, %3, %cst_5 {dimension_numbers = #tpu.dot_dimension_numbers<[1], [0], [0], [1], [0, 0, 1, 1], [], []>} : vector<128x512xf32>, vector<512x16xf32>, vector<128x16xf32> -> vector<128x16xf32>
    %5 = arith.mulf %2, %2 : vector<128x512xf32>
    %cst_6 = arith.constant dense<0.000000e+00> : vector<128x16xf32>
    %6 = tpu.matmul %5, %3, %cst_6 {dimension_numbers = #tpu.dot_dimension_numbers<[1], [0], [0], [1], [0, 0, 1, 1], [], []>} : vector<128x512xf32>, vector<512x16xf32>, vector<128x16xf32> -> vector<128x16xf32>
    %cst_7 = arith.constant 3.125000e-02 : f32
    %7 = vector.broadcast %cst_7 : f32 to vector<128x16xf32>
    %8 = arith.mulf %4, %7 : vector<128x16xf32>
    %cst_8 = arith.constant 3.125000e-02 : f32
    %9 = vector.broadcast %cst_8 : f32 to vector<128x16xf32>
    %10 = arith.mulf %6, %9 : vector<128x16xf32>
    %11 = arith.mulf %8, %8 : vector<128x16xf32>
    %12 = arith.subf %10, %11 : vector<128x16xf32>
    %cst_9 = arith.constant 0.000000e+00 : f32
    %13 = vector.broadcast %cst_9 : f32 to vector<128x16xf32>
    %14 = arith.maximumf %12, %13 : vector<128x16xf32>
    %cst_10 = arith.constant 9.99999974E-6 : f32
    %15 = vector.broadcast %cst_10 : f32 to vector<128x16xf32>
    %16 = arith.addf %14, %15 : vector<128x16xf32>
    %17 = math.rsqrt %16 : vector<128x16xf32>
    %c0_11 = arith.constant 0 : index
    %c0_12 = arith.constant 0 : index
    %18 = vector.load %arg6[%c0_11, %c0_12] : memref<16x512xf32, #tpu.memory_space<vmem>>, vector<16x512xf32>
    %cst_13 = arith.constant dense<0.000000e+00> : vector<128x512xf32>
    %19 = tpu.matmul %17, %18, %cst_13 {dimension_numbers = #tpu.dot_dimension_numbers<[1], [0], [0], [1], [0, 0, 1, 1], [], []>} : vector<128x16xf32>, vector<16x512xf32>, vector<128x512xf32> -> vector<128x512xf32>
    %cst_14 = arith.constant 0.000000e+00 : f32
    %20 = vector.broadcast %cst_14 : f32 to vector<128x16xf32>
    %21 = arith.subf %20, %8 : vector<128x16xf32>
    %22 = arith.mulf %21, %17 : vector<128x16xf32>
    %cst_15 = arith.constant dense<0.000000e+00> : vector<128x512xf32>
    %23 = tpu.matmul %22, %18, %cst_15 {dimension_numbers = #tpu.dot_dimension_numbers<[1], [0], [0], [1], [0, 0, 1, 1], [], []>} : vector<128x16xf32>, vector<16x512xf32>, vector<128x512xf32> -> vector<128x512xf32>
    %24 = arith.mulf %2, %19 : vector<128x512xf32>
    %25 = arith.addf %24, %23 : vector<128x512xf32>
    %c0_16 = arith.constant 0 : index
    %c0_17 = arith.constant 0 : index
    %26 = vector.load %arg4[%c0_16, %c0_17] : memref<1x512xf32, #tpu.memory_space<vmem>>, vector<1x512xf32>
    %27 = vector.broadcast %26 : vector<1x512xf32> to vector<128x512xf32>
    %28 = arith.addf %25, %27 : vector<128x512xf32>
    %c0_18 = arith.constant 0 : index
    %c0_19 = arith.constant 0 : index
    %29 = vector.load %arg7[%c0_18, %c0_19] : memref<128x512xf32, #tpu.memory_space<vmem>>, vector<128x512xf32>
    tpu.vector_store %arg7[%c0_18, %c0_19], %28 {strides = array<i32>} : memref<128x512xf32, #tpu.memory_space<vmem>>, vector<128x512xf32>,
    return
  }
  func.func @transform_0(%arg0: i32, %arg1: i32) -> (i32, i32) {
    %c0_i32 = arith.constant 0 : i32
    %c0_i32_0 = arith.constant 0 : i32
    return %arg0, %c0_i32 : i32, i32
  }
  func.func @transform_1(%arg0: i32, %arg1: i32) -> (i32, i32) {
    %c0_i32 = arith.constant 0 : i32
    %c0_i32_0 = arith.constant 0 : i32
    return %c0_i32, %arg1 : i32, i32
  }
  func.func @transform_2(%arg0: i32, %arg1: i32) -> (i32, i32) {
    %c0_i32 = arith.constant 0 : i32
    %c0_i32_0 = arith.constant 0 : i32
    return %c0_i32, %arg1 : i32, i32
  }
  func.func @transform_3(%arg0: i32, %arg1: i32) -> (i32, i32) {
    %c0_i32 = arith.constant 0 : i32
    %c0_i32_0 = arith.constant 0 : i32
    %c0_i32_1 = arith.constant 0 : i32
    return %c0_i32, %c0_i32_0 : i32, i32
  }
  func.func @transform_4(%arg0: i32, %arg1: i32) -> (i32, i32) {
    %c0_i32 = arith.constant 0 : i32
    %c0_i32_0 = arith.constant 0 : i32
    %c0_i32_1 = arith.constant 0 : i32
    return %c0_i32, %c0_i32_0 : i32, i32
  }
  func.func @transform_5(%arg0: i32, %arg1: i32) -> (i32, i32) {
    %c0_i32 = arith.constant 0 : i32
    return %arg0, %arg1 : i32, i32
  }
}

</mosaic_0001>

<bundles_post_ra>
// kernel: final_patch_expand_x4.1
= control target key start
LH: loop header
LB: loop body
LE: loop exit
PB: predicated region body
PF: predicated region fallthrough
CT: control target
= control target key end

     0   :  { %v4627_v3 = vmov 0.0   ;;  %vm52_vm0 = vcmask 261120   ;;  %vm1251_vm1 = vcmask 130048   ;;  %s4621_s1 = inlined_call_operand.vmem [shape: f32[32,512], index: 1, kind: input, shape index: {}]   ;;  %s4622_s0 = inlined_call_operand.vmem [shape: f32[128,32], index: 0, kind: input, shape index: {}]   ;;  %s4623_s3 = inlined_call_operand.vmem [shape: f32[512,16], index: 3, kind: input, shape index: {}]   ;;  %s4624_s4 = inlined_call_operand.vmem [shape: f32[16,512], index: 4, kind: input, shape index: {}]   ;;  %s4625_s2 = inlined_call_operand.vmem [shape: f32[1,512], index: 2, kind: input, shape index: {}]   ;;  %s4626_s5 = inlined_call_operand.vmem [shape: f32[128,512], index: 5, kind: output, shape index: {}]  }
   0x1   :  { %v37_v0 = vld [vmem:[%s4621_s1 + $0x8] sm:$0xff]  ;;  %v39_v2 = vld [vmem:[%s4621_s1 + $0x18] sm:$0xff]  ;;  %165 = vmatprep.mubr.f32.mxu0 %v4627_v3  ;;  %326 = vmatprep.mubr.f32.mxu1 %v4627_v3  ;;  %v36_v6 = vld [vmem:[%s4621_s1] sm:$0xff] }
   0x2   :  { %v41_v1 = vld [vmem:[%s4621_s1 + $0x28] sm:$0xff]  ;;  %v43_v5 = vld [vmem:[%s4621_s1 + $0x38] sm:$0xff]  ;;  %v40_v7 = vld [vmem:[%s4621_s1 + $0x20] sm:$0xff] }
   0x3   :  { %v2722_v4 = vpack.c.bf16 %v41_v1, %v37_v0  ;;  %v2730_v8 = vpack.c.bf16 %v43_v5, %v39_v2  ;;  %v2724_v9 = vpack.c.bf16 %v40_v7, %v36_v6  ;;  %v38_v10 = vld [vmem:[%s4621_s1 + $0x10] sm:$0xff]  ;;  %v45_v12 = vld [vmem:[%s4621_s1 + $0x48] sm:$0xff]  ;;  %v47_v15 = vld [vmem:[%s4621_s1 + $0x58] sm:$0xff] }
   0x4   :  { %v42_v11 = vld [vmem:[%s4621_s1 + $0x30] sm:$0xff]  ;;  %v49_v14 = vld [vmem:[%s4621_s1 + $0x68] sm:$0xff]  ;;  %v51_v16 = vld [vmem:[%s4621_s1 + $0x78] sm:$0xff] }
   0x5   :  { %2723 = vmatprep.subr.bf16.mxu0 %v2722_v4  ;;  %v2732_v13 = vpack.c.bf16 %v42_v11, %v38_v10  ;;  %2731 = vmatprep.subr.bf16.mxu1 %v2730_v8  ;;  %v2726_v17 = vpack.c.bf16 %v49_v14, %v45_v12  ;;  %v2734_v18 = vpack.c.bf16 %v51_v16, %v47_v15  ;;  %v44_v19 = vld [vmem:[%s4621_s1 + $0x40] sm:$0xff]  ;;  %v46_v21 = vld [vmem:[%s4621_s1 + $0x50] sm:$0xff]  ;;  %v21_v26 = vld [vmem:[%s4622_s0 + $0x8] sm:$0xff] }
   0x6   :  { %2725 = vmatpush1.bf16.msra.mxu0 %v2724_v9  ;;  %v48_v20 = vld [vmem:[%s4621_s1 + $0x60] sm:$0xff]  ;;  %v50_v23 = vld [vmem:[%s4621_s1 + $0x70] sm:$0xff]  ;;  %v440_v28 = vld [vmem:[%s4623_s3 + $0x88] sm:$0xff] }
   0x7   :  { %2733 = vmatpush1.bf16.msra.mxu1 %v2732_v13  ;;  %v2728_v22 = vpack.c.bf16 %v48_v20, %v44_v19  ;;  %2727 = vmatprep.subr.bf16.mxu0 %v2726_v17  ;;  %v2736_v24 = vpack.c.bf16 %v50_v23, %v46_v21  ;;  %v20_v25 = vld [vmem:[%s4622_s0] sm:$0xff]  ;;  %v472_v30 = vld [vmem:[%s4623_s3 + $0x188] sm:$0xff]  ;;  %v441_v38 = vld [vmem:[%s4623_s3 + $0x90] sm:$0xff] }
   0x8   :  { %2735 = vmatprep.subr.bf16.mxu1 %v2734_v18  ;;  %v439_v27 = vld [vmem:[%s4623_s3 + $0x80] sm:$0xff]  ;;  %v424_v34 = vld [vmem:[%s4623_s3 + $0x8] sm:$0xff]  ;;  %v442_v39 = vld [vmem:[%s4623_s3 + $0x98] sm:$0xff] }
   0x9   :  { %v471_v29 = vld [vmem:[%s4623_s3 + $0x180] sm:$0xff]  ;;  %v3017_v31 = vpack.c.bf16 %v440_v28, %v439_v27  ;;  %v456_v37 = vld [vmem:[%s4623_s3 + $0x108] sm:$0xff]  ;;  %v22_v40 = vld [vmem:[%s4622_s0 + $0x10] sm:$0xff]  ;;  %v3049_v42 = vpack.c.bf16 %v442_v39, %v441_v38 }
   0xa   :  { %2729 = vmatpush1.bf16.msra.mxu0 %v2728_v22  ;;  %v3019_v32 = vpack.c.bf16 %v472_v30, %v471_v29  ;;  %v423_v33 = vld [vmem:[%s4623_s3] sm:$0xff]  ;;  %v473_v43 = vld [vmem:[%s4623_s3 + $0x190] sm:$0xff]  ;;  %v474_v44 = vld [vmem:[%s4623_s3 + $0x198] sm:$0xff] }
   0xb   :  { %2737 = vmatpush1.bf16.msra.mxu1 %v2736_v24  ;;  %v455_v35 = vld [vmem:[%s4623_s3 + $0x100] sm:$0xff]  ;;  %v3031_v36 = vpack.c.bf16 %v424_v34, %v423_v33  ;;  %2739 = vmatprep.subr.bf16.mxu0 %v3017_v31  ;;  %v425_v45 = vld [vmem:[%s4623_s3 + $0x10] sm:$0xff]  ;;  %v3061_v46 = vpack.c.bf16 %v474_v44, %v473_v43  ;;  %v426_v47 = vld [vmem:[%s4623_s3 + $0x18] sm:$0xff] }
   0xc   :  { %2771 = vmatprep.subr.bf16.mxu1 %v3019_v32  ;;  %v3047_v41 = vpack.c.bf16 %v456_v37, %v455_v35  ;;  %v457_v48 = vld [vmem:[%s4623_s3 + $0x110] sm:$0xff]  ;;  %v458_v49 = vld [vmem:[%s4623_s3 + $0x118] sm:$0xff]  ;;  %v443_v50 = vld [vmem:[%s4623_s3 + $0xa0] sm:$0xff]  ;;  %v3085_v53 = vpack.c.bf16 %v426_v47, %v425_v45 }
   0xd   :  { %2306 = vmatmul.mubr.msk.f32.vlgmr.msra.gmra.mrb[0].mxu0 %vm52_vm0, %v20_v25  ;;  %v444_v51 = vld [vmem:[%s4623_s3 + $0xa8] sm:$0xff]  ;;  %v475_v52 = vld [vmem:[%s4623_s3 + $0x1a0] sm:$0xff]  ;;  %v3092_v55 = vpack.c.bf16 %v458_v49, %v457_v48  ;;  %v445_v62 = vld [vmem:[%s4623_s3 + $0xb0] sm:$0xff] }
   0xe   :  { %2322 = vmatmul.mubr.msk.f32.vlgmr.msra.gmra.mrb[0].mxu1 %vm52_vm0, %v20_v25  ;;  %171 = vmatprep.mubr.f32.mxu0 %v4627_v3  ;;  %v476_v54 = vld [vmem:[%s4623_s3 + $0x1a8] sm:$0xff]  ;;  %v3094_v56 = vpack.c.bf16 %v444_v51, %v443_v50  ;;  %v427_v57 = vld [vmem:[%s4623_s3 + $0x20] sm:$0xff]  ;;  %v446_v63 = vld [vmem:[%s4623_s3 + $0xb8] sm:$0xff] }
   0xf   :  { %332 = vmatprep.mubr.f32.mxu1 %v4627_v3  ;;  %2741 = vmatpush3.bf16.msra.mxu0 %v3031_v36  ;;  %v428_v58 = vld [vmem:[%s4623_s3 + $0x28] sm:$0xff]  ;;  %v459_v59 = vld [vmem:[%s4623_s3 + $0x120] sm:$0xff]  ;;  %v3107_v60 = vpack.c.bf16 %v476_v54, %v475_v52  ;;  %v23_v0 = vld [vmem:[%s4622_s0 + $0x18] sm:$0xff]  ;;  %v3137_v6 = vpack.c.bf16 %v446_v63, %v445_v62 }
  0x10   :  { %2773 = vmatpush3.bf16.msra.mxu1 %v3047_v41  ;;  %2743 = vmatprep.subr.bf16.mxu0 %v3049_v42  ;;  %v460_v61 = vld [vmem:[%s4623_s3 + $0x128] sm:$0xff]  ;;  %v477_v1 = vld [vmem:[%s4623_s3 + $0x1b0] sm:$0xff]  ;;  %v478_v2 = vld [vmem:[%s4623_s3 + $0x1b8] sm:$0xff]  ;;  %v3131_v4 = vpack.c.bf16 %v428_v58, %v427_v57 }
  0x11   :  { %2307 = vmatmul.mubr.msk.f32.gmra.mrb[2].mxu0 %vm52_vm0, %v21_v26  ;;  %2775 = vmatprep.subr.bf16.mxu1 %v3061_v46  ;;  %v3135_v5 = vpack.c.bf16 %v460_v61, %v459_v59  ;;  %v429_v7 = vld [vmem:[%s4623_s3 + $0x30] sm:$0xff]  ;;  %v430_v8 = vld [vmem:[%s4623_s3 + $0x38] sm:$0xff]  ;;  %v3150_v10 = vpack.c.bf16 %v478_v2, %v477_v1  ;;  %v447_v12 = vld [vmem:[%s4623_s3 + $0xc0] sm:$0xff] }
  0x12   :  { %2323 = vmatmul.mubr.msk.f32.gmra.mrb[2].mxu1 %vm52_vm0, %v21_v26  ;;  %177 = vmatprep.mubr.f32.mxu0 %v4627_v3  ;;  %v461_v9 = vld [vmem:[%s4623_s3 + $0x130] sm:$0xff]  ;;  %v462_v11 = vld [vmem:[%s4623_s3 + $0x138] sm:$0xff]  ;;  %v448_v13 = vld [vmem:[%s4623_s3 + $0xc8] sm:$0xff]  ;;  %v3174_v17 = vpack.c.bf16 %v430_v8, %v429_v7 }
  0x13   :  { %338 = vmatprep.mubr.f32.mxu1 %v4627_v3  ;;  %2745 = vmatpush3.bf16.msra.mxu0 %v3085_v53  ;;  %v24_v14 = vld [vmem:[%s4622_s0 + $0x20] sm:$0xff]  ;;  %v480_v16 = vld [vmem:[%s4623_s3 + $0x1c8] sm:$0xff]  ;;  %v3178_v18 = vpack.c.bf16 %v462_v11, %v461_v9  ;;  %v3180_v19 = vpack.c.bf16 %v448_v13, %v447_v12  ;;  %v449_v25 = vld [vmem:[%s4623_s3 + $0xd0] sm:$0xff] }
  0x14   :  { %2777 = vmatpush3.bf16.msra.mxu1 %v3092_v55  ;;  %2747 = vmatprep.subr.bf16.mxu0 %v3094_v56  ;;  %v479_v15 = vld [vmem:[%s4623_s3 + $0x1c0] sm:$0xff]  ;;  %v432_v21 = vld [vmem:[%s4623_s3 + $0x48] sm:$0xff]  ;;  %v450_v26 = vld [vmem:[%s4623_s3 + $0xd8] sm:$0xff] }
  0x15   :  { %2308 = vmatmul.mubr.msk.f32.gmra.mrb[4].mxu0 %vm52_vm0, %v22_v40  ;;  %2779 = vmatprep.subr.bf16.mxu1 %v3107_v60  ;;  %v431_v20 = vld [vmem:[%s4623_s3 + $0x40] sm:$0xff]  ;;  %v3193_v23 = vpack.c.bf16 %v480_v16, %v479_v15  ;;  %v464_v24 = vld [vmem:[%s4623_s3 + $0x148] sm:$0xff]  ;;  %v481_v28 = vld [vmem:[%s4623_s3 + $0x1d0] sm:$0xff]  ;;  %v3223_v34 = vpack.c.bf16 %v450_v26, %v449_v25 }
  0x16   :  { %2324 = vmatmul.mubr.msk.f32.gmra.mrb[4].mxu1 %vm52_vm0, %v22_v40  ;;  %183 = vmatprep.mubr.f32.mxu0 %v4627_v3  ;;  %v463_v22 = vld [vmem:[%s4623_s3 + $0x140] sm:$0xff]  ;;  %v25_v27 = vld [vmem:[%s4622_s0 + $0x28] sm:$0xff]  ;;  %v482_v29 = vld [vmem:[%s4623_s3 + $0x1d8] sm:$0xff]  ;;  %v3217_v30 = vpack.c.bf16 %v432_v21, %v431_v20 }
  0x17   :  { %344 = vmatprep.mubr.f32.mxu1 %v4627_v3  ;;  %2749 = vmatpush3.bf16.msra.mxu0 %v3131_v4  ;;  %v3221_v33 = vpack.c.bf16 %v464_v24, %v463_v22  ;;  %v433_v35 = vld [vmem:[%s4623_s3 + $0x50] sm:$0xff]  ;;  %v434_v37 = vld [vmem:[%s4623_s3 + $0x58] sm:$0xff]  ;;  %v3236_v39 = vpack.c.bf16 %v482_v29, %v481_v28  ;;  %v451_v43 = vld [vmem:[%s4623_s3 + $0xe0] sm:$0xff] }
  0x18   :  { %2781 = vmatpush3.bf16.msra.mxu1 %v3135_v5  ;;  %2751 = vmatprep.subr.bf16.mxu0 %v3137_v6  ;;  %v465_v38 = vld [vmem:[%s4623_s3 + $0x150] sm:$0xff]  ;;  %v466_v40 = vld [vmem:[%s4623_s3 + $0x158] sm:$0xff]  ;;  %v452_v44 = vld [vmem:[%s4623_s3 + $0xe8] sm:$0xff]  ;;  %v3260_v49 = vpack.c.bf16 %v434_v37, %v433_v35 }
  0x19   :  { %2309 = vmatmul.mubr.msk.f32.gmra.mrb[6].mxu0 %vm52_vm0, %v23_v0  ;;  %2783 = vmatprep.subr.bf16.mxu1 %v3150_v10  ;;  %v26_v45 = vld [vmem:[%s4622_s0 + $0x30] sm:$0xff]  ;;  %v483_v47 = vld [vmem:[%s4623_s3 + $0x1e0] sm:$0xff]  ;;  %v484_v48 = vld [vmem:[%s4623_s3 + $0x1e8] sm:$0xff]  ;;  %v3264_v50 = vpack.c.bf16 %v466_v40, %v465_v38  ;;  %v3266_v51 = vpack.c.bf16 %v452_v44, %v451_v43 }
  0x1a   :  { %2325 = vmatmul.mubr.msk.f32.gmra.mrb[6].mxu1 %vm52_vm0, %v23_v0  ;;  %189 = vmatprep.mubr.f32.mxu0 %v4627_v3  ;;  %v435_v52 = vld [vmem:[%s4623_s3 + $0x60] sm:$0xff]  ;;  %v436_v54 = vld [vmem:[%s4623_s3 + $0x68] sm:$0xff]  ;;  %v3279_v58 = vpack.c.bf16 %v484_v48, %v483_v47  ;;  %v453_v61 = vld [vmem:[%s4623_s3 + $0xf0] sm:$0xff] }
  0x1b   :  { %350 = vmatprep.mubr.f32.mxu1 %v4627_v3  ;;  %2753 = vmatpush3.bf16.msra.mxu0 %v3174_v17  ;;  %v467_v57 = vld [vmem:[%s4623_s3 + $0x160] sm:$0xff]  ;;  %v468_v59 = vld [vmem:[%s4623_s3 + $0x168] sm:$0xff]  ;;  %v454_v62 = vld [vmem:[%s4623_s3 + $0xf8] sm:$0xff]  ;;  %v3303_v2 = vpack.c.bf16 %v436_v54, %v435_v52 }
  0x1c   :  { %2785 = vmatpush3.bf16.msra.mxu1 %v3178_v18  ;;  %2755 = vmatprep.subr.bf16.mxu0 %v3180_v19  ;;  %v27_v63 = vld [vmem:[%s4622_s0 + $0x38] sm:$0xff]  ;;  %v485_v0 = vld [vmem:[%s4623_s3 + $0x1f0] sm:$0xff]  ;;  %v3307_v7 = vpack.c.bf16 %v468_v59, %v467_v57  ;;  %v3309_v8 = vpack.c.bf16 %v454_v62, %v453_v61  ;;  %v28_v15 = vld [vmem:[%s4622_s0 + $0x40] sm:$0xff] }
  0x1d   :  { %2310 = vmatmul.mubr.msk.f32.gmra.mrb[8].mxu0 %vm52_vm0, %v24_v14  ;;  %2787 = vmatprep.subr.bf16.mxu1 %v3193_v23  ;;  %v486_v1 = vld [vmem:[%s4623_s3 + $0x1f8] sm:$0xff]  ;;  %v437_v9 = vld [vmem:[%s4623_s3 + $0x70] sm:$0xff]  ;;  %v29_v21 = vld [vmem:[%s4622_s0 + $0x48] sm:$0xff] }
  0x1e   :  { %2326 = vmatmul.mubr.msk.f32.gmra.mrb[8].mxu1 %vm52_vm0, %v24_v14  ;;  %195 = vmatprep.mubr.f32.mxu0 %v4627_v3  ;;  %v438_v11 = vld [vmem:[%s4623_s3 + $0x78] sm:$0xff]  ;;  %v3319_v12 = vpack.c.bf16 %v486_v1, %v485_v0  ;;  %v469_v13 = vld [vmem:[%s4623_s3 + $0x170] sm:$0xff]  ;;  %v33_v24 = vld [vmem:[%s4622_s0 + $0x68] sm:$0xff] }
  0x1f   :  { %356 = vmatprep.mubr.f32.mxu1 %v4627_v3  ;;  %2757 = vmatpush3.bf16.msra.mxu0 %v3217_v30  ;;  %v470_v14 = vld [vmem:[%s4623_s3 + $0x178] sm:$0xff]  ;;  %v3334_v16 = vpack.c.bf16 %v438_v11, %v437_v9  ;;  %v30_v22 = vld [vmem:[%s4622_s0 + $0x50] sm:$0xff] }
  0x20   :  { %2789 = vmatpush3.bf16.msra.mxu1 %v3221_v33  ;;  %2759 = vmatprep.subr.bf16.mxu0 %v3223_v34  ;;  %v3338_v20 = vpack.c.bf16 %v470_v14, %v469_v13  ;;  %v34_v25 = vld [vmem:[%s4622_s0 + $0x70] sm:$0xff]  ;;  %v35_v26 = vld [vmem:[%s4622_s0 + $0x78] sm:$0xff] }
  0x21   :  { %2311 = vmatmul.mubr.msk.f32.gmra.mrb[10].mxu0 %vm52_vm0, %v25_v27  ;;  %2791 = vmatprep.subr.bf16.mxu1 %v3236_v39 }
  0x22   :  { %2327 = vmatmul.mubr.msk.f32.gmra.mrb[10].mxu1 %vm52_vm0, %v25_v27  ;;  %201 = vmatprep.mubr.f32.mxu0 %v4627_v3 }
  0x23   :  { %362 = vmatprep.mubr.f32.mxu1 %v4627_v3  ;;  %2761 = vmatpush3.bf16.msra.mxu0 %v3260_v49 }
  0x24   :  { %2793 = vmatpush3.bf16.msra.mxu1 %v3264_v50  ;;  %2763 = vmatprep.subr.bf16.mxu0 %v3266_v51 }
  0x25   :  { %2312 = vmatmul.mubr.msk.f32.gmra.mrb[12].mxu0 %vm52_vm0, %v26_v45  ;;  %2795 = vmatprep.subr.bf16.mxu1 %v3279_v58 }
  0x26   :  { %2328 = vmatmul.mubr.msk.f32.gmra.mrb[12].mxu1 %vm52_vm0, %v26_v45  ;;  %207 = vmatprep.mubr.f32.mxu0 %v4627_v3 }
  0x27   :  { %368 = vmatprep.mubr.f32.mxu1 %v4627_v3  ;;  %2765 = vmatpush3.bf16.msra.mxu0 %v3303_v2 }
  0x28   :  { %2797 = vmatpush3.bf16.msra.mxu1 %v3307_v7  ;;  %2767 = vmatprep.subr.bf16.mxu0 %v3309_v8 }
  0x29   :  { %2313 = vmatmul.mubr.msk.f32.gmra.mrb[14].mxu0 %vm52_vm0, %v27_v63  ;;  %2799 = vmatprep.subr.bf16.mxu1 %v3319_v12 }
  0x2a   :  { %2329 = vmatmul.mubr.msk.f32.gmra.mrb[14].mxu1 %vm52_vm0, %v27_v63  ;;  %213 = vmatprep.mubr.f32.mxu0 %v4627_v3 }
  0x2b   :  { %374 = vmatprep.mubr.f32.mxu1 %v4627_v3  ;;  %2769 = vmatpush3.bf16.msra.mxu0 %v3334_v16 }
  0x2c   :  { %2801 = vmatpush3.bf16.msra.mxu1 %v3338_v20  ;;  %2803 = vmatprep.subr.bf16.mxu0 %v3017_v31  ;;  %v31_v31 = vld [vmem:[%s4622_s0 + $0x58] sm:$0xff] }
  0x2d   :  { %2314 = vmatmul.mubr.msk.f32.gmra.mrb[16].mxu0 %vm52_vm0, %v28_v15  ;;  %2835 = vmatprep.subr.bf16.mxu1 %v3019_v32  ;;  %v32_v32 = vld [vmem:[%s4622_s0 + $0x60] sm:$0xff] }
  0x2e   :  { %2330 = vmatmul.mubr.msk.f32.gmra.mrb[16].mxu1 %vm52_vm0, %v28_v15  ;;  %219 = vmatprep.mubr.f32.mxu0 %v4627_v3 }
  0x2f   :  { %380 = vmatprep.mubr.f32.mxu1 %v4627_v3 }
  0x31   :  { %2315 = vmatmul.mubr.msk.f32.gmra.mrb[18].mxu0 %vm52_vm0, %v29_v21 }
  0x32   :  { %2331 = vmatmul.mubr.msk.f32.gmra.mrb[18].mxu1 %vm52_vm0, %v29_v21  ;;  %225 = vmatprep.mubr.f32.mxu0 %v4627_v3 }
  0x33   :  { %386 = vmatprep.mubr.f32.mxu1 %v4627_v3 }
  0x35   :  { %2316 = vmatmul.mubr.msk.f32.gmra.mrb[20].mxu0 %vm52_vm0, %v30_v22 }
  0x36   :  { %2332 = vmatmul.mubr.msk.f32.gmra.mrb[20].mxu1 %vm52_vm0, %v30_v22  ;;  %231 = vmatprep.mubr.f32.mxu0 %v4627_v3 }
  0x37   :  { %392 = vmatprep.mubr.f32.mxu1 %v4627_v3 }
  0x39   :  { %2317 = vmatmul.mubr.msk.f32.gmra.mrb[22].mxu0 %vm52_vm0, %v31_v31 }
  0x3a   :  { %2333 = vmatmul.mubr.msk.f32.gmra.mrb[22].mxu1 %vm52_vm0, %v31_v31  ;;  %237 = vmatprep.mubr.f32.mxu0 %v4627_v3 }
  0x3b   :  { %398 = vmatprep.mubr.f32.mxu1 %v4627_v3 }
  0x3d   :  { %2318 = vmatmul.mubr.msk.f32.gmra.mrb[24].mxu0 %vm52_vm0, %v32_v32 }
  0x3e   :  { %2334 = vmatmul.mubr.msk.f32.gmra.mrb[24].mxu1 %vm52_vm0, %v32_v32  ;;  %243 = vmatprep.mubr.f32.mxu0 %v4627_v3 }
  0x3f   :  { %404 = vmatprep.mubr.f32.mxu1 %v4627_v3 }
  0x41   :  { %2319 = vmatmul.mubr.msk.f32.gmra.mrb[26].mxu0 %vm52_vm0, %v33_v24 }
  0x42   :  { %2335 = vmatmul.mubr.msk.f32.gmra.mrb[26].mxu1 %vm52_vm0, %v33_v24  ;;  %249 = vmatprep.mubr.f32.mxu0 %v4627_v3 }
  0x43   :  { %410 = vmatprep.mubr.f32.mxu1 %v4627_v3 }
  0x45   :  { %2320 = vmatmul.mubr.msk.f32.gmra.mrb[28].mxu0 %vm52_vm0, %v34_v25 }
  0x46   :  { %2336 = vmatmul.mubr.msk.f32.gmra.mrb[28].mxu1 %vm52_vm0, %v34_v25  ;;  %255 = vmatprep.mubr.f32.mxu0 %v4627_v3 }
  0x47   :  { %416 = vmatprep.mubr.f32.mxu1 %v4627_v3 }
  0x49   :  { %2321 = vmatmul.mubr.msk.f32.gmra.mrb[30].mxu0 %vm52_vm0, %v35_v26 }
  0x4a   :  { %2337 = vmatmul.mubr.msk.f32.gmra.mrb[30].mxu1 %vm52_vm0, %v35_v26 }
  0xe0   :  { %v3396_v27 = vpop.f32.mrb[0].mxu0 }
  0xe1   :  { %v3398_v28 = vpop.f32.mrb[0].mxu1  ;;  %v3400_v29 = vpop.f32.mrb[1].mxu0 }
  0xe2   :  { %4675 = vst [vmem:[#allocation2_spill] sm:$0xff] %v3398_v28  ;;  %4676 = vst [vmem:[#allocation3_spill] sm:$0xff] %v3400_v29  ;;  %v3402_v35 = vpop.f32.mrb[1].mxu1  ;;  %551 = vmatprep.mubr.f32.mxu0 %v3400_v29  ;;  %v778_v3 = vmul.f32 %v3400_v29, %v3400_v29  ;;  %v779_v29 = vmul.f32 %v3398_v28, %v3398_v28 }
  0xe3   :  { %4677 = vst [vmem:[#allocation4_spill] sm:$0xff] %v3402_v35  ;;  %696 = vmatprep.mubr.f32.mxu1 %v3402_v35  ;;  %552 = vmatmul.mubr.f32.vlgmr.msra.gmra.mrb[32].mxu0 %v3396_v27 }
  0xe4   :  { %697 = vmatmul.mubr.f32.vlgmr.msra.gmra.mrb[32].mxu1 %v3398_v28  ;;  %2805 = vmatpush3.bf16.msra.mxu0 %v3031_v36  ;;  %v3409_v37 = vpop.f32.mrb[2].mxu0 }
  0xe5   :  { %2837 = vmatpush3.bf16.msra.mxu1 %v3047_v41  ;;  %v3412_v38 = vpop.f32.mrb[2].mxu1  ;;  %v3414_v40 = vpop.f32.mrb[3].mxu0  ;;  %2807 = vmatprep.subr.bf16.mxu0 %v3049_v42 }
  0xe6   :  { %v3417_v43 = vpop.f32.mrb[3].mxu1  ;;  %556 = vmatprep.mubr.f32.mxu0 %v3414_v40  ;;  %2839 = vmatprep.subr.bf16.mxu1 %v3061_v46 }
  0xe7   :  { %701 = vmatprep.mubr.f32.mxu1 %v3417_v43  ;;  %557 = vmatmul.mubr.f32.gmra.mrb[34].mxu0 %v3409_v37 }
  0xe8   :  { %702 = vmatmul.mubr.f32.gmra.mrb[34].mxu1 %v3412_v38  ;;  %v3424_v36 = vpop.f32.mrb[4].mxu0  ;;  %2809 = vmatpush3.bf16.msra.mxu0 %v3085_v53 }
  0xe9   :  { %v3427_v41 = vpop.f32.mrb[4].mxu1  ;;  %v3429_v44 = vpop.f32.mrb[5].mxu0  ;;  %2841 = vmatpush3.bf16.msra.mxu1 %v3092_v55  ;;  %2811 = vmatprep.subr.bf16.mxu0 %v3094_v56 }
  0xea   :  { %v3433_v42 = vpop.f32.mrb[5].mxu1  ;;  %561 = vmatprep.mubr.f32.mxu0 %v3429_v44  ;;  %2843 = vmatprep.subr.bf16.mxu1 %v3107_v60 }
  0xeb   :  { %706 = vmatprep.mubr.f32.mxu1 %v3433_v42  ;;  %562 = vmatmul.mubr.f32.gmra.mrb[36].mxu0 %v3424_v36  ;;  %v788_v28 = vmul.f32 %v3433_v42, %v3433_v42 }
  0xec   :  { %707 = vmatmul.mubr.f32.gmra.mrb[36].mxu1 %v3427_v41  ;;  %v3440_v46 = vpop.f32.mrb[6].mxu0  ;;  %2813 = vmatpush3.bf16.msra.mxu0 %v3131_v4 }
  0xed   :  { %v3443_v53 = vpop.f32.mrb[6].mxu1  ;;  %v3445_v55 = vpop.f32.mrb[7].mxu0  ;;  %2845 = vmatpush3.bf16.msra.mxu1 %v3135_v5  ;;  %2815 = vmatprep.subr.bf16.mxu0 %v3137_v6 }
  0xee   :  { %v3449_v56 = vpop.f32.mrb[7].mxu1  ;;  %566 = vmatprep.mubr.f32.mxu0 %v3445_v55  ;;  %2847 = vmatprep.subr.bf16.mxu1 %v3150_v10 }
  0xef   :  { %711 = vmatprep.mubr.f32.mxu1 %v3449_v56  ;;  %567 = vmatmul.mubr.f32.gmra.mrb[38].mxu0 %v3440_v46 }
  0xf0   :  { %712 = vmatmul.mubr.f32.gmra.mrb[38].mxu1 %v3443_v53  ;;  %v3456_v60 = vpop.f32.mrb[8].mxu0  ;;  %2817 = vmatpush3.bf16.msra.mxu0 %v3174_v17 }
  0xf1   :  { %v3459_v4 = vpop.f32.mrb[8].mxu1  ;;  %v3461_v5 = vpop.f32.mrb[9].mxu0  ;;  %2849 = vmatpush3.bf16.msra.mxu1 %v3178_v18  ;;  %2819 = vmatprep.subr.bf16.mxu0 %v3180_v19 }
  0xf2   :  { %v3465_v6 = vpop.f32.mrb[9].mxu1  ;;  %571 = vmatprep.mubr.f32.mxu0 %v3461_v5  ;;  %2851 = vmatprep.subr.bf16.mxu1 %v3193_v23 }
  0xf3   :  { %716 = vmatprep.mubr.f32.mxu1 %v3465_v6  ;;  %572 = vmatmul.mubr.f32.gmra.mrb[40].mxu0 %v3456_v60 }
  0xf4   :  { %717 = vmatmul.mubr.f32.gmra.mrb[40].mxu1 %v3459_v4  ;;  %v3472_v10 = vpop.f32.mrb[10].mxu0  ;;  %2821 = vmatpush3.bf16.msra.mxu0 %v3217_v30 }
  0xf5   :  { %v3475_v17 = vpop.f32.mrb[10].mxu1  ;;  %v3477_v18 = vpop.f32.mrb[11].mxu0  ;;  %2853 = vmatpush3.bf16.msra.mxu1 %v3221_v33  ;;  %2823 = vmatprep.subr.bf16.mxu0 %v3223_v34 }
  0xf6   :  { %v3481_v19 = vpop.f32.mrb[11].mxu1  ;;  %576 = vmatprep.mubr.f32.mxu0 %v3477_v18  ;;  %2855 = vmatprep.subr.bf16.mxu1 %v3236_v39 }
  0xf7   :  { %721 = vmatprep.mubr.f32.mxu1 %v3481_v19  ;;  %577 = vmatmul.mubr.f32.gmra.mrb[42].mxu0 %v3472_v10 }
  0xf8   :  { %722 = vmatmul.mubr.f32.gmra.mrb[42].mxu1 %v3475_v17  ;;  %v3488_v23 = vpop.f32.mrb[12].mxu0  ;;  %2825 = vmatpush3.bf16.msra.mxu0 %v3260_v49 }
  0xf9   :  { %v3491_v30 = vpop.f32.mrb[12].mxu1  ;;  %v3493_v33 = vpop.f32.mrb[13].mxu0  ;;  %2857 = vmatpush3.bf16.msra.mxu1 %v3264_v50  ;;  %2827 = vmatprep.subr.bf16.mxu0 %v3266_v51 }
  0xfa   :  { %4678 = vst [vmem:[#allocation5_spill] sm:$0xff] %v3493_v33  ;;  %v3497_v34 = vpop.f32.mrb[13].mxu1  ;;  %581 = vmatprep.mubr.f32.mxu0 %v3493_v33  ;;  %2859 = vmatprep.subr.bf16.mxu1 %v3279_v58 }
  0xfb   :  { %4679 = vst [vmem:[#allocation6_spill] sm:$0xff] %v3497_v34  ;;  %726 = vmatprep.mubr.f32.mxu1 %v3497_v34  ;;  %582 = vmatmul.mubr.f32.gmra.mrb[44].mxu0 %v3488_v23 }
  0xfc   :  { %727 = vmatmul.mubr.f32.gmra.mrb[44].mxu1 %v3491_v30  ;;  %v3504_v39 = vpop.f32.mrb[14].mxu0  ;;  %2829 = vmatpush3.bf16.msra.mxu0 %v3303_v2 }
  0xfd   :  { %4680 = vst [vmem:[#allocation7_spill] sm:$0xff] %v3504_v39  ;;  %v3507_v45 = vpop.f32.mrb[14].mxu1  ;;  %v3509_v47 = vpop.f32.mrb[15].mxu0  ;;  %2861 = vmatpush3.bf16.msra.mxu1 %v3307_v7  ;;  %2831 = vmatprep.subr.bf16.mxu0 %v3309_v8 }
  0xfe   :  { %4681 = vst [vmem:[#allocation8_spill] sm:$0xff] %v3507_v45  ;;  %4682 = vst [vmem:[#allocation9_spill] sm:$0xff] %v3509_v47  ;;  %v3513_v48 = vpop.f32.mrb[15].mxu1  ;;  %586 = vmatprep.mubr.f32.mxu0 %v3509_v47  ;;  %2863 = vmatprep.subr.bf16.mxu1 %v3319_v12 }
  0xff   :  { %4683 = vst [vmem:[#allocation10_spill] sm:$0xff] %v3513_v48  ;;  %731 = vmatprep.mubr.f32.mxu1 %v3513_v48  ;;  %587 = vmatmul.mubr.f32.gmra.mrb[46].mxu0 %v3504_v39 }
 0x100   :  { %732 = vmatmul.mubr.f32.gmra.mrb[46].mxu1 %v3507_v45  ;;  %v3520_v49 = vpop.f32.mrb[16].mxu0  ;;  %2833 = vmatpush3.bf16.msra.mxu0 %v3334_v16 }
 0x101   :  { %4684 = vst [vmem:[#allocation11_spill] sm:$0xff] %v3520_v49  ;;  %v3523_v50 = vpop.f32.mrb[16].mxu1  ;;  %v3525_v51 = vpop.f32.mrb[17].mxu0  ;;  %2865 = vmatpush3.bf16.msra.mxu1 %v3338_v20 }
 0x102   :  { %4685 = vst [vmem:[#allocation12_spill] sm:$0xff] %v3523_v50  ;;  %4686 = vst [vmem:[#allocation13_spill] sm:$0xff] %v3525_v51  ;;  %v3528_v52 = vpop.f32.mrb[17].mxu1  ;;  %591 = vmatprep.mubr.f32.mxu0 %v3525_v51 }
 0x103   :  { %4687 = vst [vmem:[#allocation14_spill] sm:$0xff] %v3528_v52  ;;  %736 = vmatprep.mubr.f32.mxu1 %v3528_v52  ;;  %592 = vmatmul.mubr.f32.gmra.mrb[48].mxu0 %v3520_v49 }
 0x104   :  { %737 = vmatmul.mubr.f32.gmra.mrb[48].mxu1 %v3523_v50  ;;  %v3534_v54 = vpop.f32.mrb[18].mxu0 }
 0x105   :  { %4688 = vst [vmem:[#allocation15_spill] sm:$0xff] %v3534_v54  ;;  %v3536_v57 = vpop.f32.mrb[18].mxu1  ;;  %v3538_v58 = vpop.f32.mrb[19].mxu0 }
 0x106   :  { %4689 = vst [vmem:[#allocation16_spill] sm:$0xff] %v3536_v57  ;;  %4690 = vst [vmem:[#allocation17_spill] sm:$0xff] %v3538_v58  ;;  %v3540_v59 = vpop.f32.mrb[19].mxu1  ;;  %596 = vmatprep.mubr.f32.mxu0 %v3538_v58 }
 0x107   :  { %4691 = vst [vmem:[#allocation18_spill] sm:$0xff] %v3540_v59  ;;  %741 = vmatprep.mubr.f32.mxu1 %v3540_v59  ;;  %597 = vmatmul.mubr.f32.gmra.mrb[50].mxu0 %v3534_v54 }
 0x108   :  { %742 = vmatmul.mubr.f32.gmra.mrb[50].mxu1 %v3536_v57  ;;  %v3546_v61 = vpop.f32.mrb[20].mxu0 }
 0x109   :  { %4692 = vst [vmem:[#allocation19_spill] sm:$0xff] %v3546_v61  ;;  %v3548_v62 = vpop.f32.mrb[20].mxu1  ;;  %v3550_v63 = vpop.f32.mrb[21].mxu0 }
 0x10a   :  { %4693 = vst [vmem:[#allocation20_spill] sm:$0xff] %v3548_v62  ;;  %4694 = vst [vmem:[#allocation21_spill] sm:$0xff] %v3550_v63  ;;  %v3552_v0 = vpop.f32.mrb[21].mxu1  ;;  %601 = vmatprep.mubr.f32.mxu0 %v3550_v63 }
 0x10b   :  { %4695 = vst [vmem:[#allocation22_spill] sm:$0xff] %v3552_v0  ;;  %746 = vmatprep.mubr.f32.mxu1 %v3552_v0  ;;  %602 = vmatmul.mubr.f32.gmra.mrb[52].mxu0 %v3546_v61 }
 0x10c   :  { %747 = vmatmul.mubr.f32.gmra.mrb[52].mxu1 %v3548_v62  ;;  %v3558_v1 = vpop.f32.mrb[22].mxu0 }
 0x10d   :  { %4696 = vst [vmem:[#allocation23_spill] sm:$0xff] %v3558_v1  ;;  %v3560_v2 = vpop.f32.mrb[22].mxu1  ;;  %v3562_v7 = vpop.f32.mrb[23].mxu0 }
 0x10e   :  { %4697 = vst [vmem:[#allocation24_spill] sm:$0xff] %v3560_v2  ;;  %4698 = vst [vmem:[#allocation25_spill] sm:$0xff] %v3562_v7  ;;  %v3564_v8 = vpop.f32.mrb[23].mxu1  ;;  %606 = vmatprep.mubr.f32.mxu0 %v3562_v7 }
 0x10f   :  { %4699 = vst [vmem:[#allocation26_spill] sm:$0xff] %v3564_v8  ;;  %751 = vmatprep.mubr.f32.mxu1 %v3564_v8  ;;  %607 = vmatmul.mubr.f32.gmra.mrb[54].mxu0 %v3558_v1 }
 0x110   :  { %752 = vmatmul.mubr.f32.gmra.mrb[54].mxu1 %v3560_v2  ;;  %v3570_v9 = vpop.f32.mrb[24].mxu0 }
 0x111   :  { %4700 = vst [vmem:[#allocation27_spill] sm:$0xff] %v3570_v9  ;;  %v3572_v11 = vpop.f32.mrb[24].mxu1  ;;  %v3574_v12 = vpop.f32.mrb[25].mxu0 }
 0x112   :  { %4701 = vst [vmem:[#allocation28_spill] sm:$0xff] %v3572_v11  ;;  %4702 = vst [vmem:[#allocation29_spill] sm:$0xff] %v3574_v12  ;;  %v3576_v13 = vpop.f32.mrb[25].mxu1  ;;  %611 = vmatprep.mubr.f32.mxu0 %v3574_v12 }
 0x113   :  { %4703 = vst [vmem:[#allocation30_spill] sm:$0xff] %v3576_v13  ;;  %756 = vmatprep.mubr.f32.mxu1 %v3576_v13  ;;  %612 = vmatmul.mubr.f32.gmra.mrb[56].mxu0 %v3570_v9 }
 0x114   :  { %757 = vmatmul.mubr.f32.gmra.mrb[56].mxu1 %v3572_v11  ;;  %v3582_v14 = vpop.f32.mrb[26].mxu0 }
 0x115   :  { %4704 = vst [vmem:[#allocation31_spill] sm:$0xff] %v3582_v14  ;;  %v3584_v15 = vpop.f32.mrb[26].mxu1  ;;  %v3586_v16 = vpop.f32.mrb[27].mxu0 }
 0x116   :  { %4705 = vst [vmem:[#allocation32_spill] sm:$0xff] %v3584_v15  ;;  %4706 = vst [vmem:[#allocation33_spill] sm:$0xff] %v3586_v16  ;;  %v3588_v20 = vpop.f32.mrb[27].mxu1  ;;  %616 = vmatprep.mubr.f32.mxu0 %v3586_v16 }
 0x117   :  { %4707 = vst [vmem:[#allocation34_spill] sm:$0xff] %v3588_v20  ;;  %761 = vmatprep.mubr.f32.mxu1 %v3588_v20  ;;  %617 = vmatmul.mubr.f32.gmra.mrb[58].mxu0 %v3582_v14 }
 0x118   :  { %762 = vmatmul.mubr.f32.gmra.mrb[58].mxu1 %v3584_v15  ;;  %v3594_v21 = vpop.f32.mrb[28].mxu0 }
 0x119   :  { %4708 = vst [vmem:[#allocation35_spill] sm:$0xff] %v3594_v21  ;;  %v3596_v22 = vpop.f32.mrb[28].mxu1  ;;  %v3598_v31 = vpop.f32.mrb[29].mxu0 }
 0x11a   :  { %4709 = vst [vmem:[#allocation36_spill] sm:$0xff] %v3596_v22  ;;  %4710 = vst [vmem:[#allocation37_spill] sm:$0xff] %v3598_v31  ;;  %v3600_v32 = vpop.f32.mrb[29].mxu1  ;;  %621 = vmatprep.mubr.f32.mxu0 %v3598_v31 }
 0x11b   :  { %4711 = vst [vmem:[#allocation38_spill] sm:$0xff] %v3600_v32  ;;  %766 = vmatprep.mubr.f32.mxu1 %v3600_v32  ;;  %622 = vmatmul.mubr.f32.gmra.mrb[60].mxu0 %v3594_v21  ;;  %v780_v32 = vmul.f32 %v3402_v35, %v3402_v35  ;;  %v784_v35 = vmul.f32 %v3417_v43, %v3417_v43 }
 0x11c   :  { %767 = vmatmul.mubr.f32.gmra.mrb[60].mxu1 %v3596_v22  ;;  %v3606_v24 = vpop.f32.mrb[30].mxu0  ;;  %v777_v22 = vmul.f32 %v3396_v27, %v3396_v27 }
 0x11d   :  { %4712 = vst [vmem:[#allocation39_spill] sm:$0xff] %v3606_v24  ;;  %v3608_v25 = vpop.f32.mrb[30].mxu1  ;;  %v3610_v26 = vpop.f32.mrb[31].mxu0 }
 0x11e   :  { %4713 = vst [vmem:[#allocation40_spill] sm:$0xff] %v3608_v25  ;;  %4714 = vst [vmem:[#allocation41_spill] sm:$0xff] %v3610_v26  ;;  %v3614_v15 = vpop.f32.mrb[31].mxu1  ;;  %626 = vmatprep.mubr.f32.mxu0 %v3610_v26  ;;  %v782_v26 = vmul.f32 %v3414_v40, %v3414_v40 }
 0x11f   :  { %4715 = vst [vmem:[#allocation42_spill] sm:$0xff] %v3614_v15  ;;  %771 = vmatprep.mubr.f32.mxu1 %v3614_v15  ;;  %627 = vmatmul.mubr.f32.gmra.mrb[62].mxu0 %v3606_v24 }
 0x120   :  { %772 = vmatmul.mubr.f32.gmra.mrb[62].mxu1 %v3608_v25  ;;  %905 = vmatprep.mubr.f32.mxu0 %v778_v3  ;;  %v781_v25 = vmul.f32 %v3409_v37, %v3409_v37  ;;  %v783_v3 = vmul.f32 %v3412_v38, %v3412_v38 }
 0x121   :  { %1050 = vmatprep.mubr.f32.mxu1 %v780_v32  ;;  %v786_v32 = vmul.f32 %v3429_v44, %v3429_v44 }
 0x123   :  { %906 = vmatmul.mubr.f32.vlgmr.msra.gmra.mrb[64].mxu0 %v777_v22  ;;  %v787_v22 = vmul.f32 %v3427_v41, %v3427_v41 }
 0x124   :  { %1051 = vmatmul.mubr.f32.vlgmr.msra.gmra.mrb[64].mxu1 %v779_v29  ;;  %910 = vmatprep.mubr.f32.mxu0 %v782_v26  ;;  %v785_v29 = vmul.f32 %v3424_v36, %v3424_v36  ;;  %v792_v26 = vmul.f32 %v3449_v56, %v3449_v56 }
 0x125   :  { %1055 = vmatprep.mubr.f32.mxu1 %v784_v35  ;;  %v790_v35 = vmul.f32 %v3445_v55, %v3445_v55 }
 0x127   :  { %911 = vmatmul.mubr.f32.gmra.mrb[66].mxu0 %v781_v25  ;;  %v789_v25 = vmul.f32 %v3440_v46, %v3440_v46 }
 0x128   :  { %1056 = vmatmul.mubr.f32.gmra.mrb[66].mxu1 %v783_v3  ;;  %915 = vmatprep.mubr.f32.mxu0 %v786_v32  ;;  %v791_v3 = vmul.f32 %v3443_v53, %v3443_v53  ;;  %v796_v32 = vmul.f32 %v3465_v6, %v3465_v6 }
 0x129   :  { %1060 = vmatprep.mubr.f32.mxu1 %v788_v28  ;;  %v794_v28 = vmul.f32 %v3461_v5, %v3461_v5 }
 0x12b   :  { %916 = vmatmul.mubr.f32.gmra.mrb[68].mxu0 %v785_v29  ;;  %v793_v29 = vmul.f32 %v3456_v60, %v3456_v60 }
 0x12c   :  { %1061 = vmatmul.mubr.f32.gmra.mrb[68].mxu1 %v787_v22  ;;  %920 = vmatprep.mubr.f32.mxu0 %v790_v35  ;;  %v795_v22 = vmul.f32 %v3459_v4, %v3459_v4  ;;  %v798_v35 = vmul.f32 %v3477_v18, %v3477_v18 }
 0x12d   :  { %1065 = vmatprep.mubr.f32.mxu1 %v792_v26  ;;  %v800_v26 = vmul.f32 %v3481_v19, %v3481_v19 }
 0x12f   :  { %921 = vmatmul.mubr.f32.gmra.mrb[70].mxu0 %v789_v25  ;;  %v797_v25 = vmul.f32 %v3472_v10, %v3472_v10 }
 0x130   :  { %1066 = vmatmul.mubr.f32.gmra.mrb[70].mxu1 %v791_v3  ;;  %925 = vmatprep.mubr.f32.mxu0 %v794_v28  ;;  %v799_v3 = vmul.f32 %v3475_v17, %v3475_v17  ;;  %v802_v28 = vmul.f32 %v3493_v33, %v3493_v33 }
 0x131   :  { %1070 = vmatprep.mubr.f32.mxu1 %v796_v32  ;;  %v804_v32 = vmul.f32 %v3497_v34, %v3497_v34 }
 0x133   :  { %926 = vmatmul.mubr.f32.gmra.mrb[72].mxu0 %v793_v29  ;;  %v801_v29 = vmul.f32 %v3488_v23, %v3488_v23 }
 0x134   :  { %1071 = vmatmul.mubr.f32.gmra.mrb[72].mxu1 %v795_v22  ;;  %930 = vmatprep.mubr.f32.mxu0 %v798_v35  ;;  %v803_v22 = vmul.f32 %v3491_v30, %v3491_v30  ;;  %v806_v35 = vmul.f32 %v3509_v47, %v3509_v47 }
 0x135   :  { %1075 = vmatprep.mubr.f32.mxu1 %v800_v26  ;;  %v808_v26 = vmul.f32 %v3513_v48, %v3513_v48 }
 0x137   :  { %931 = vmatmul.mubr.f32.gmra.mrb[74].mxu0 %v797_v25  ;;  %v805_v25 = vmul.f32 %v3504_v39, %v3504_v39 }
 0x138   :  { %1076 = vmatmul.mubr.f32.gmra.mrb[74].mxu1 %v799_v3  ;;  %935 = vmatprep.mubr.f32.mxu0 %v802_v28  ;;  %v807_v3 = vmul.f32 %v3507_v45, %v3507_v45  ;;  %v810_v28 = vmul.f32 %v3525_v51, %v3525_v51 }
 0x139   :  { %1080 = vmatprep.mubr.f32.mxu1 %v804_v32  ;;  %v812_v32 = vmul.f32 %v3528_v52, %v3528_v52 }
 0x13b   :  { %936 = vmatmul.mubr.f32.gmra.mrb[76].mxu0 %v801_v29  ;;  %v809_v29 = vmul.f32 %v3520_v49, %v3520_v49 }
 0x13c   :  { %1081 = vmatmul.mubr.f32.gmra.mrb[76].mxu1 %v803_v22  ;;  %940 = vmatprep.mubr.f32.mxu0 %v806_v35  ;;  %v811_v22 = vmul.f32 %v3523_v50, %v3523_v50  ;;  %v814_v35 = vmul.f32 %v3538_v58, %v3538_v58 }
 0x13d   :  { %1085 = vmatprep.mubr.f32.mxu1 %v808_v26  ;;  %v816_v26 = vmul.f32 %v3540_v59, %v3540_v59 }
 0x13f   :  { %941 = vmatmul.mubr.f32.gmra.mrb[78].mxu0 %v805_v25  ;;  %v813_v25 = vmul.f32 %v3534_v54, %v3534_v54 }
 0x140   :  { %1086 = vmatmul.mubr.f32.gmra.mrb[78].mxu1 %v807_v3  ;;  %945 = vmatprep.mubr.f32.mxu0 %v810_v28  ;;  %v815_v3 = vmul.f32 %v3536_v57, %v3536_v57  ;;  %v818_v28 = vmul.f32 %v3550_v63, %v3550_v63 }
 0x141   :  { %1090 = vmatprep.mubr.f32.mxu1 %v812_v32  ;;  %v820_v32 = vmul.f32 %v3552_v0, %v3552_v0 }
 0x143   :  { %946 = vmatmul.mubr.f32.gmra.mrb[80].mxu0 %v809_v29  ;;  %v817_v29 = vmul.f32 %v3546_v61, %v3546_v61 }
 0x144   :  { %1091 = vmatmul.mubr.f32.gmra.mrb[80].mxu1 %v811_v22  ;;  %950 = vmatprep.mubr.f32.mxu0 %v814_v35  ;;  %v819_v22 = vmul.f32 %v3548_v62, %v3548_v62  ;;  %v822_v35 = vmul.f32 %v3562_v7, %v3562_v7 }
 0x145   :  { %1095 = vmatprep.mubr.f32.mxu1 %v816_v26  ;;  %v824_v26 = vmul.f32 %v3564_v8, %v3564_v8 }
 0x147   :  { %951 = vmatmul.mubr.f32.gmra.mrb[82].mxu0 %v813_v25  ;;  %v821_v25 = vmul.f32 %v3558_v1, %v3558_v1 }
 0x148   :  { %1096 = vmatmul.mubr.f32.gmra.mrb[82].mxu1 %v815_v3  ;;  %955 = vmatprep.mubr.f32.mxu0 %v818_v28  ;;  %v823_v3 = vmul.f32 %v3560_v2, %v3560_v2  ;;  %v826_v28 = vmul.f32 %v3574_v12, %v3574_v12  ;;  %v4717_v12 = vld [vmem:[#allocation38_spill] sm:$0xff] }
 0x149   :  { %1100 = vmatprep.mubr.f32.mxu1 %v820_v32  ;;  %v828_v32 = vmul.f32 %v3576_v13, %v3576_v13 }
 0x14b   :  { %956 = vmatmul.mubr.f32.gmra.mrb[84].mxu0 %v817_v29  ;;  %v825_v29 = vmul.f32 %v3570_v9, %v3570_v9 }
 0x14c   :  { %1101 = vmatmul.mubr.f32.gmra.mrb[84].mxu1 %v819_v22  ;;  %960 = vmatprep.mubr.f32.mxu0 %v822_v35  ;;  %v827_v22 = vmul.f32 %v3572_v11, %v3572_v11  ;;  %v830_v35 = vmul.f32 %v3586_v16, %v3586_v16  ;;  %v834_v16 = vmul.f32 %v3598_v31, %v3598_v31  ;;  %v4718_v31 = vld [vmem:[#allocation36_spill] sm:$0xff] }
 0x14d   :  { %1105 = vmatprep.mubr.f32.mxu1 %v824_v26  ;;  %v832_v26 = vmul.f32 %v3588_v20, %v3588_v20  ;;  %v836_v11 = vmul.f32 %v4717_v12, %v4717_v12 }
 0x14f   :  { %961 = vmatmul.mubr.f32.gmra.mrb[86].mxu0 %v821_v25  ;;  %v1244_v25 = vld [vmem:[%s4624_s4 + $0x8] sm:$0xff] }
 0x150   :  { %1106 = vmatmul.mubr.f32.gmra.mrb[86].mxu1 %v823_v3  ;;  %965 = vmatprep.mubr.f32.mxu0 %v826_v28  ;;  %v1248_v3 = vld [vmem:[%s4624_s4 + $0x28] sm:$0xff]  ;;  %v1246_v28 = vld [vmem:[%s4624_s4 + $0x18] sm:$0xff] }
 0x151   :  { %1110 = vmatprep.mubr.f32.mxu1 %v828_v32  ;;  %v829_v32 = vmul.f32 %v3582_v14, %v3582_v14  ;;  %v2866_v20 = vpack.c.bf16 %v1248_v3, %v1244_v25  ;;  %v1247_v25 = vld [vmem:[%s4624_s4 + $0x20] sm:$0xff]  ;;  %v1245_v3 = vld [vmem:[%s4624_s4 + $0x10] sm:$0xff]  ;;  %v4719_v14 = vld [vmem:[#allocation41_spill] sm:$0xff] }
 0x153   :  { %966 = vmatmul.mubr.f32.gmra.mrb[88].mxu0 %v825_v29  ;;  %v1250_v29 = vld [vmem:[%s4624_s4 + $0x38] sm:$0xff]  ;;  %2867 = vmatprep.subr.bf16.mxu0 %v2866_v20 }
 0x154   :  { %1111 = vmatmul.mubr.f32.gmra.mrb[88].mxu1 %v827_v22  ;;  %970 = vmatprep.mubr.f32.mxu0 %v830_v35  ;;  %v4716_v22 = vld [vmem:[#allocation32_spill] sm:$0xff]  ;;  %v2870_v13 = vpack.c.bf16 %v1250_v29, %v1246_v28  ;;  %v833_v29 = vmul.f32 %v3594_v21, %v3594_v21 }
 0x155   :  { %1115 = vmatprep.mubr.f32.mxu1 %v832_v26  ;;  %v831_v35 = vmul.f32 %v4716_v22, %v4716_v22  ;;  %v1243_v26 = vld [vmem:[%s4624_s4] sm:$0xff]  ;;  %v835_v22 = vmul.f32 %v4718_v31, %v4718_v31 }
 0x156   :  { %v3755_v28 = vpack.c.bf16 %v1247_v25, %v1243_v26  ;;  %2871 = vmatprep.subr.bf16.mxu1 %v2870_v13  ;;  %v4720_v26 = vld [vmem:[#allocation40_spill] sm:$0xff] }
 0x157   :  { %971 = vmatmul.mubr.f32.gmra.mrb[90].mxu0 %v829_v32  ;;  %v1249_v32 = vld [vmem:[%s4624_s4 + $0x30] sm:$0xff]  ;;  %v839_v25 = vmul.f32 %v4720_v26, %v4720_v26 }
 0x158   :  { %1116 = vmatmul.mubr.f32.gmra.mrb[90].mxu1 %v831_v35  ;;  %975 = vmatprep.mubr.f32.mxu0 %v834_v16  ;;  %v3762_v12 = vpack.c.bf16 %v1249_v32, %v1245_v3  ;;  %v838_v35 = vmul.f32 %v4719_v14, %v4719_v14  ;;  %v840_v16 = vmul.f32 %v3614_v15, %v3614_v15  ;;  %v4721_v3 = vmov 0.0  }
 0x159   :  { %1120 = vmatprep.mubr.f32.mxu1 %v836_v11  ;;  %2869 = vmatpush1.bf16.msra.mxu0 %v3755_v28  ;;  %v837_v11 = vmul.f32 %v3606_v24, %v3606_v24 }
 0x15a   :  { %2873 = vmatpush1.bf16.msra.mxu1 %v3762_v12  ;;  %2875 = vmatprep.subr.bf16.mxu0 %v2866_v20 }
 0x15b   :  { %976 = vmatmul.mubr.f32.gmra.mrb[92].mxu0 %v833_v29  ;;  %2879 = vmatprep.subr.bf16.mxu1 %v2870_v13 }
 0x15c   :  { %1121 = vmatmul.mubr.f32.gmra.mrb[92].mxu1 %v835_v22  ;;  %980 = vmatprep.mubr.f32.mxu0 %v838_v35 }
 0x15d   :  { %1125 = vmatprep.mubr.f32.mxu1 %v840_v16 }
 0x15f   :  { %981 = vmatmul.mubr.f32.gmra.mrb[94].mxu0 %v837_v11 }
 0x160   :  { %1126 = vmatmul.mubr.f32.gmra.mrb[94].mxu1 %v839_v25  ;;  %1364 = vmatprep.mubr.f32.mxu0 %v4721_v3 }
 0x161   :  { %1525 = vmatprep.mubr.f32.mxu1 %v4721_v3 }
 0x1b6   :  { %v2434_v32 = vpop.f32.mrb[32].mxu0 }
 0x1b7   :  { %v2514_v29 = vpop.f32.mrb[32].mxu1  ;;  %v2435_v15 = vpop.f32.mrb[33].mxu0 }
 0x1b8   :  { %v2436_v22 = vadd.f32 %v2435_v15, %v2434_v32  ;;  %v2515_v35 = vpop.f32.mrb[33].mxu1 }
 0x1b9   :  { %v2516_v14 = vadd.f32 %v2515_v35, %v2514_v29 }
 0x1ba   :  { %v2437_v31 = vpop.f32.mrb[34].mxu0 }
 0x1bb   :  { %v3778_v24 = vadd.f32 %v2516_v14, %v2436_v22  ;;  %v2517_v20 = vpop.f32.mrb[34].mxu1  ;;  %v2438_v16 = vpop.f32.mrb[35].mxu0 }
 0x1bc   :  { %v2439_v21 = vadd.f32 %v2438_v16, %v2437_v31  ;;  %v2518_v26 = vpop.f32.mrb[35].mxu1 }
 0x1bd   :  { %v2519_v13 = vadd.f32 %v2518_v26, %v2517_v20 }
 0x1be   :  { %v2440_v11 = vpop.f32.mrb[36].mxu0 }
 0x1bf   :  { %v3780_v25 = vadd.f32 %v2519_v13, %v2439_v21  ;;  %v2520_v9 = vpop.f32.mrb[36].mxu1  ;;  %v2441_v8 = vpop.f32.mrb[37].mxu0 }
 0x1c0   :  { %v2442_v7 = vadd.f32 %v2441_v8, %v2440_v11  ;;  %v2521_v2 = vpop.f32.mrb[37].mxu1 }
 0x1c1   :  { %v2522_v1 = vadd.f32 %v2521_v2, %v2520_v9 }
 0x1c2   :  { %v2443_v0 = vpop.f32.mrb[38].mxu0 }
 0x1c3   :  { %v3782_v15 = vadd.f32 %v2522_v1, %v2442_v7  ;;  %v2523_v32 = vpop.f32.mrb[38].mxu1  ;;  %v2444_v29 = vpop.f32.mrb[39].mxu0 }
 0x1c4   :  { %v2445_v14 = vadd.f32 %v2444_v29, %v2443_v0  ;;  %v2524_v22 = vpop.f32.mrb[39].mxu1 }
 0x1c5   :  { %v2525_v35 = vadd.f32 %v2524_v22, %v2523_v32 }
 0x1c6   :  { %v2446_v63 = vpop.f32.mrb[40].mxu0 }
 0x1c7   :  { %v3784_v31 = vadd.f32 %v2525_v35, %v2445_v14  ;;  %v2526_v26 = vpop.f32.mrb[40].mxu1  ;;  %v2447_v20 = vpop.f32.mrb[41].mxu0 }
 0x1c8   :  { %v2448_v21 = vadd.f32 %v2447_v20, %v2446_v63  ;;  %v2527_v16 = vpop.f32.mrb[41].mxu1 }
 0x1c9   :  { %v2528_v13 = vadd.f32 %v2527_v16, %v2526_v26 }
 0x1ca   :  { %v2449_v62 = vpop.f32.mrb[42].mxu0 }
 0x1cb   :  { %v3786_v8 = vadd.f32 %v2528_v13, %v2448_v21  ;;  %v2529_v2 = vpop.f32.mrb[42].mxu1  ;;  %v2450_v9 = vpop.f32.mrb[43].mxu0 }
 0x1cc   :  { %v2451_v1 = vadd.f32 %v2450_v9, %v2449_v62  ;;  %v2530_v7 = vpop.f32.mrb[43].mxu1 }
 0x1cd   :  { %v2531_v11 = vadd.f32 %v2530_v7, %v2529_v2 }
 0x1ce   :  { %v2452_v61 = vpop.f32.mrb[44].mxu0 }
 0x1cf   :  { %v3788_v0 = vadd.f32 %v2531_v11, %v2451_v1  ;;  %v2532_v32 = vpop.f32.mrb[44].mxu1  ;;  %v2453_v29 = vpop.f32.mrb[45].mxu0 }
 0x1d0   :  { %v2454_v14 = vadd.f32 %v2453_v29, %v2452_v61  ;;  %v2533_v22 = vpop.f32.mrb[45].mxu1 }
 0x1d1   :  { %v2534_v35 = vadd.f32 %v2533_v22, %v2532_v32 }
 0x1d2   :  { %v2455_v59 = vpop.f32.mrb[46].mxu0 }
 0x1d3   :  { %v3790_v63 = vadd.f32 %v2534_v35, %v2454_v14  ;;  %v2535_v26 = vpop.f32.mrb[46].mxu1  ;;  %v2456_v20 = vpop.f32.mrb[47].mxu0 }
 0x1d4   :  { %v2457_v21 = vadd.f32 %v2456_v20, %v2455_v59  ;;  %v2536_v16 = vpop.f32.mrb[47].mxu1 }
 0x1d5   :  { %v2537_v13 = vadd.f32 %v2536_v16, %v2535_v26 }
 0x1d6   :  { %v2458_v58 = vpop.f32.mrb[48].mxu0 }
 0x1d7   :  { %v3792_v62 = vadd.f32 %v2537_v13, %v2457_v21  ;;  %v2538_v2 = vpop.f32.mrb[48].mxu1  ;;  %v2459_v9 = vpop.f32.mrb[49].mxu0 }
 0x1d8   :  { %v2460_v1 = vadd.f32 %v2459_v9, %v2458_v58  ;;  %v2539_v7 = vpop.f32.mrb[49].mxu1 }
 0x1d9   :  { %v2540_v11 = vadd.f32 %v2539_v7, %v2538_v2 }
 0x1da   :  { %v2461_v57 = vpop.f32.mrb[50].mxu0 }
 0x1db   :  { %v3794_v61 = vadd.f32 %v2540_v11, %v2460_v1  ;;  %v2541_v32 = vpop.f32.mrb[50].mxu1  ;;  %v2462_v29 = vpop.f32.mrb[51].mxu0 }
 0x1dc   :  { %v2463_v14 = vadd.f32 %v2462_v29, %v2461_v57  ;;  %v2542_v22 = vpop.f32.mrb[51].mxu1 }
 0x1dd   :  { %v2543_v35 = vadd.f32 %v2542_v22, %v2541_v32 }
 0x1de   :  { %v2464_v54 = vpop.f32.mrb[52].mxu0 }
 0x1df   :  { %v3796_v59 = vadd.f32 %v2543_v35, %v2463_v14  ;;  %v2544_v26 = vpop.f32.mrb[52].mxu1  ;;  %v2465_v20 = vpop.f32.mrb[53].mxu0 }
 0x1e0   :  { %v2466_v21 = vadd.f32 %v2465_v20, %v2464_v54  ;;  %v2545_v16 = vpop.f32.mrb[53].mxu1 }
 0x1e1   :  { %v2546_v13 = vadd.f32 %v2545_v16, %v2544_v26 }
 0x1e2   :  { %v2467_v52 = vpop.f32.mrb[54].mxu0 }
 0x1e3   :  { %v3798_v58 = vadd.f32 %v2546_v13, %v2466_v21  ;;  %v2547_v2 = vpop.f32.mrb[54].mxu1  ;;  %v2468_v9 = vpop.f32.mrb[55].mxu0 }
 0x1e4   :  { %v2469_v1 = vadd.f32 %v2468_v9, %v2467_v52  ;;  %v2548_v7 = vpop.f32.mrb[55].mxu1 }
 0x1e5   :  { %v2549_v11 = vadd.f32 %v2548_v7, %v2547_v2 }
 0x1e6   :  { %v2470_v51 = vpop.f32.mrb[56].mxu0 }
 0x1e7   :  { %v3800_v57 = vadd.f32 %v2549_v11, %v2469_v1  ;;  %v2550_v32 = vpop.f32.mrb[56].mxu1  ;;  %v2471_v29 = vpop.f32.mrb[57].mxu0 }
 0x1e8   :  { %v2472_v14 = vadd.f32 %v2471_v29, %v2470_v51  ;;  %v2551_v22 = vpop.f32.mrb[57].mxu1 }
 0x1e9   :  { %v2552_v35 = vadd.f32 %v2551_v22, %v2550_v32 }
 0x1ea   :  { %v2473_v50 = vpop.f32.mrb[58].mxu0 }
 0x1eb   :  { %v3802_v54 = vadd.f32 %v2552_v35, %v2472_v14  ;;  %v2553_v26 = vpop.f32.mrb[58].mxu1  ;;  %v2474_v20 = vpop.f32.mrb[59].mxu0 }
 0x1ec   :  { %v2475_v21 = vadd.f32 %v2474_v20, %v2473_v50  ;;  %v2554_v16 = vpop.f32.mrb[59].mxu1 }
 0x1ed   :  { %v2555_v13 = vadd.f32 %v2554_v16, %v2553_v26 }
 0x1ee   :  { %v2476_v49 = vpop.f32.mrb[60].mxu0 }
 0x1ef   :  { %v3804_v52 = vadd.f32 %v2555_v13, %v2475_v21  ;;  %v2556_v2 = vpop.f32.mrb[60].mxu1  ;;  %v2477_v9 = vpop.f32.mrb[61].mxu0  ;;  %v3811_v13 = vmul.f32 0.03125, %v3778_v24 }
 0x1f0   :  { %v2478_v1 = vadd.f32 %v2477_v9, %v2476_v49  ;;  %v2557_v7 = vpop.f32.mrb[61].mxu1 }
 0x1f1   :  { %v2558_v11 = vadd.f32 %v2557_v7, %v2556_v2 }
 0x1f2   :  { %v2479_v48 = vpop.f32.mrb[62].mxu0 }
 0x1f3   :  { %v3806_v51 = vadd.f32 %v2558_v11, %v2478_v1  ;;  %v2559_v32 = vpop.f32.mrb[62].mxu1  ;;  %v2480_v29 = vpop.f32.mrb[63].mxu0 }
 0x1f4   :  { %v2481_v14 = vadd.f32 %v2480_v29, %v2479_v48  ;;  %v2560_v22 = vpop.f32.mrb[63].mxu1  ;;  %v1163_v48 = vmul.f32 %v3811_v13, %v3811_v13 }
 0x1f5   :  { %v2561_v35 = vadd.f32 %v2560_v22, %v2559_v32  ;;  %v3816_v32 = vmul.f32 0.03125, %v3780_v25 }
 0x1f6   :  { %v2594_v47 = vpop.f32.mrb[64].mxu0 }
 0x1f7   :  { %v3808_v50 = vadd.f32 %v2561_v35, %v2481_v14  ;;  %v2674_v26 = vpop.f32.mrb[64].mxu1  ;;  %v2595_v20 = vpop.f32.mrb[65].mxu0 }
 0x1f8   :  { %v2596_v21 = vadd.f32 %v2595_v20, %v2594_v47  ;;  %v2675_v16 = vpop.f32.mrb[65].mxu1 }
 0x1f9   :  { %v2676_v49 = vadd.f32 %v2675_v16, %v2674_v26  ;;  %v3819_v26 = vmul.f32 0.03125, %v3782_v15  ;;  %v3826_v15 = vmul.f32 0.03125, %v3784_v31 }
 0x1fa   :  { %v2597_v2 = vpop.f32.mrb[66].mxu0 }
 0x1fb   :  { %v1053_v9 = vadd.f32 %v2676_v49, %v2596_v21  ;;  %v2677_v1 = vpop.f32.mrb[66].mxu1  ;;  %v2598_v7 = vpop.f32.mrb[67].mxu0  ;;  %v1164_v49 = vmul.f32 %v3816_v32, %v3816_v32 }
 0x1fc   :  { %v2599_v11 = vadd.f32 %v2598_v7, %v2597_v2  ;;  %v2678_v45 = vpop.f32.mrb[67].mxu1 }
 0x1fd   :  { %v1147_v29 = vmul.f32 0.03125, %v1053_v9  ;;  %v2679_v14 = vadd.f32 %v2678_v45, %v2677_v1 }
 0x1fe   :  { %v2600_v47 = vpop.f32.mrb[68].mxu0 }
 0x1ff   :  { %v1179_v22 = vsub.f32 %v1147_v29, %v1163_v48  ;;  %v1058_v35 = vadd.f32 %v2679_v14, %v2599_v11  ;;  %v2680_v24 = vpop.f32.mrb[68].mxu1  ;;  %v2601_v20 = vpop.f32.mrb[69].mxu0  ;;  %v1165_v11 = vmul.f32 %v3819_v26, %v3819_v26 }
 0x200   :  { %v2602_v21 = vadd.f32 %v2601_v20, %v2600_v47  ;;  %v2681_v16 = vpop.f32.mrb[69].mxu1 }
 0x201   :  { %v1195_v2 = vmax.f32 %v1179_v22, 0.0  ;;  %v1148_v7 = vmul.f32 0.03125, %v1058_v35  ;;  %v2682_v39 = vadd.f32 %v2681_v16, %v2680_v24 }
 0x202   :  { %v2603_v25 = vpop.f32.mrb[70].mxu0 }
 0x203   :  { %v1211_v34 = vadd.f32 1e-05, %v1195_v2  ;;  %v1180_v9 = vsub.f32 %v1148_v7, %v1164_v49  ;;  %v1063_v45 = vadd.f32 %v2682_v39, %v2602_v21  ;;  %v2683_v1 = vpop.f32.mrb[70].mxu1  ;;  %v2604_v48 = vpop.f32.mrb[71].mxu0  ;;  %v1166_v21 = vmul.f32 %v3826_v15, %v3826_v15 }
 0x204   :  { %v2605_v29 = vadd.f32 %v2604_v48, %v2603_v25  ;;  %v2684_v14 = vpop.f32.mrb[71].mxu1  ;;  %v3831_v7 = vmul.f32 0.03125, %v3786_v8 }
 0x205   :  { %2883 = vrsqrt.f32 %v1211_v34  ;;  %v1196_v47 = vmax.f32 %v1180_v9, 0.0  ;;  %v1149_v20 = vmul.f32 0.03125, %v1063_v45  ;;  %v2685_v22 = vadd.f32 %v2684_v14, %v2683_v1 }
 0x206   :  { %v2606_v35 = vpop.f32.mrb[72].mxu0 }
 0x207   :  { %v1212_v24 = vadd.f32 1e-05, %v1196_v47  ;;  %v1181_v16 = vsub.f32 %v1149_v20, %v1165_v11  ;;  %v1068_v2 = vadd.f32 %v2685_v22, %v2605_v29  ;;  %v2686_v49 = vpop.f32.mrb[72].mxu1  ;;  %v2607_v39 = vpop.f32.mrb[73].mxu0  ;;  %v1167_v47 = vmul.f32 %v3831_v7, %v3831_v7 }
 0x208   :  { %v2608_v31 = vadd.f32 %v2607_v39, %v2606_v35  ;;  %v2687_v33 = vpop.f32.mrb[73].mxu1  ;;  %v3836_v20 = vmul.f32 0.03125, %v3788_v0 }
 0x209   :  { %2885 = vrsqrt.f32 %v1212_v24  ;;  %v1197_v25 = vmax.f32 %v1181_v16, 0.0  ;;  %v1150_v34 = vmul.f32 0.03125, %v1068_v2  ;;  %v2688_v9 = vadd.f32 %v2687_v33, %v2686_v49 }
 0x20a   :  { %v2609_v45 = vpop.f32.mrb[74].mxu0  ;;  %v1622_v33 = vsub.f32 0.0, %v3811_v13  ;;  %v1168_v0 = vmul.f32 %v3836_v20, %v3836_v20 }
 0x20b   :  { %v1213_v1 = vadd.f32 1e-05, %v1197_v25  ;;  %v1182_v48 = vsub.f32 %v1150_v34, %v1166_v21  ;;  %v1073_v14 = vadd.f32 %v2688_v9, %v2608_v31  ;;  %v2689_v11 = vpop.f32.mrb[74].mxu1  ;;  %v2610_v29 = vpop.f32.mrb[75].mxu0  ;;  %v3842_v9 = vmul.f32 0.03125, %v3790_v63 }
 0x20c   :  { %v2611_v8 = vadd.f32 %v2610_v29, %v2609_v45  ;;  %v2690_v22 = vpop.f32.mrb[75].mxu1  ;;  %v1623_v29 = vsub.f32 0.0, %v3816_v32 }
 0x20d   :  { %2887 = vrsqrt.f32 %v1213_v1  ;;  %v1198_v35 = vmax.f32 %v1182_v48, 0.0  ;;  %v1151_v24 = vmul.f32 0.03125, %v1073_v14  ;;  %v2691_v16 = vadd.f32 %v2690_v22, %v2689_v11 }
 0x20e   :  { %v2612_v2 = vpop.f32.mrb[76].mxu0 }
 0x20f   :  { %v2884_v49 = vpop.eup %2883  ;;  %v1214_v39 = vadd.f32 1e-05, %v1198_v35  ;;  %v1183_v21 = vsub.f32 %v1151_v24, %v1167_v47  ;;  %v1078_v31 = vadd.f32 %v2691_v16, %v2611_v8  ;;  %v2692_v25 = vpop.f32.mrb[76].mxu1 }
 0x210   :  { %v2613_v34 = vpop.f32.mrb[77].mxu0  ;;  %v2693_v1 = vpop.f32.mrb[77].mxu1  ;;  %2338 = vmatmul.mubr.msk.f32.vlgmr.msra.gmra.mrb[96].mxu0 %vm1251_vm1, %v2884_v49  ;;  %2354 = vmatmul.mubr.msk.f32.vlgmr.msra.gmra.mrb[96].mxu1 %vm1251_vm1, %v2884_v49  ;;  %v3846_v13 = vmul.f32 %v2884_v49, %v1622_v33  ;;  %v1169_v33 = vmul.f32 %v3842_v9, %v3842_v9 }
 0x211   :  { %v2614_v45 = vadd.f32 %v2613_v34, %v2612_v2  ;;  %2889 = vrsqrt.f32 %v1214_v39  ;;  %v1199_v48 = vmax.f32 %v1183_v21, 0.0  ;;  %v1152_v14 = vmul.f32 0.03125, %v1078_v31  ;;  %2877 = vmatpush1.bf16.msra.mxu0 %v3755_v28  ;;  %2881 = vmatpush1.bf16.msra.mxu1 %v3762_v12 }
 0x212   :  { %v2694_v11 = vadd.f32 %v2693_v1, %v2692_v25  ;;  %v2615_v63 = vpop.f32.mrb[78].mxu0  ;;  %1370 = vmatprep.mubr.f32.mxu0 %v4721_v3  ;;  %1531 = vmatprep.mubr.f32.mxu1 %v4721_v3  ;;  %v3856_v28 = vmul.f32 0.03125, %v3792_v62  ;;  %v1624_v31 = vsub.f32 0.0, %v3819_v26 }
 0x213   :  { %v2886_v47 = vpop.eup %2885  ;;  %v1215_v8 = vadd.f32 1e-05, %v1199_v48  ;;  %v1184_v22 = vsub.f32 %v1152_v14, %v1168_v0  ;;  %v2695_v24 = vpop.f32.mrb[78].mxu1 }
 0x214   :  { %v1083_v35 = vadd.f32 %v2694_v11, %v2614_v45  ;;  %v2616_v16 = vpop.f32.mrb[79].mxu0  ;;  %v2696_v2 = vpop.f32.mrb[79].mxu1  ;;  %2339 = vmatmul.mubr.msk.f32.gmra.mrb[98].mxu0 %vm1251_vm1, %v2886_v47  ;;  %2355 = vmatmul.mubr.msk.f32.gmra.mrb[98].mxu1 %vm1251_vm1, %v2886_v47  ;;  %v3860_v32 = vmul.f32 %v2886_v47, %v1623_v29  ;;  %v1170_v14 = vmul.f32 %v3856_v28, %v3856_v28  ;;  %v3868_v11 = vmul.f32 0.03125, %v3794_v61 }
 0x215   :  { %v2617_v12 = vadd.f32 %v2616_v16, %v2615_v63  ;;  %2891 = vrsqrt.f32 %v1215_v8  ;;  %v1200_v49 = vmax.f32 %v1184_v22, 0.0  ;;  %v2697_v21 = vadd.f32 %v2696_v2, %v2695_v24  ;;  %1376 = vmatprep.mubr.f32.mxu0 %v4721_v3  ;;  %1537 = vmatprep.mubr.f32.mxu1 %v4721_v3 }
 0x216   :  { %v1153_v39 = vmul.f32 0.03125, %v1083_v35  ;;  %v2618_v62 = vpop.f32.mrb[80].mxu0  ;;  %v1625_v35 = vsub.f32 0.0, %v3826_v15 }
 0x217   :  { %v2888_v25 = vpop.eup %2887  ;;  %v1216_v34 = vadd.f32 1e-05, %v1200_v49  ;;  %v1088_v45 = vadd.f32 %v2697_v21, %v2617_v12  ;;  %v2698_v1 = vpop.f32.mrb[80].mxu1  ;;  %v3880_v21 = vmul.f32 0.03125, %v3796_v59 }
 0x218   :  { %v1185_v0 = vsub.f32 %v1153_v39, %v1169_v33  ;;  %v2619_v48 = vpop.f32.mrb[81].mxu0  ;;  %v2699_v63 = vpop.f32.mrb[81].mxu1  ;;  %2340 = vmatmul.mubr.msk.f32.gmra.mrb[100].mxu0 %vm1251_vm1, %v2888_v25  ;;  %2356 = vmatmul.mubr.msk.f32.gmra.mrb[100].mxu1 %vm1251_vm1, %v2888_v25  ;;  %v3872_v26 = vmul.f32 %v2888_v25, %v1624_v31  ;;  %v1171_v39 = vmul.f32 %v3868_v11, %v3868_v11 }
 0x219   :  { %v2620_v29 = vadd.f32 %v2619_v48, %v2618_v62  ;;  %2893 = vrsqrt.f32 %v1216_v34  ;;  %v1154_v8 = vmul.f32 0.03125, %v1088_v45  ;;  %v2700_v22 = vadd.f32 %v2699_v63, %v2698_v1  ;;  %1382 = vmatprep.mubr.f32.mxu0 %v4721_v3  ;;  %1543 = vmatprep.mubr.f32.mxu1 %v4721_v3 }
 0x21a   :  { %v1201_v47 = vmax.f32 %v1185_v0, 0.0  ;;  %v2621_v61 = vpop.f32.mrb[82].mxu0  ;;  %v1626_v45 = vsub.f32 0.0, %v3831_v7 }
 0x21b   :  { %v2890_v24 = vpop.eup %2889  ;;  %v1186_v33 = vsub.f32 %v1154_v8, %v1170_v14  ;;  %v1093_v12 = vadd.f32 %v2700_v22, %v2620_v29  ;;  %v2701_v2 = vpop.f32.mrb[82].mxu1  ;;  %v1172_v8 = vmul.f32 %v3880_v21, %v3880_v21  ;;  %v3892_v22 = vmul.f32 0.03125, %v3798_v58 }
 0x21c   :  { %v1217_v16 = vadd.f32 1e-05, %v1201_v47  ;;  %v2622_v49 = vpop.f32.mrb[83].mxu0  ;;  %v2702_v62 = vpop.f32.mrb[83].mxu1  ;;  %2341 = vmatmul.mubr.msk.f32.gmra.mrb[102].mxu0 %vm1251_vm1, %v2890_v24  ;;  %2357 = vmatmul.mubr.msk.f32.gmra.mrb[102].mxu1 %vm1251_vm1, %v2890_v24  ;;  %v3884_v15 = vmul.f32 %v2890_v24, %v1625_v35 }
 0x21d   :  { %v2623_v31 = vadd.f32 %v2622_v49, %v2621_v61  ;;  %v1202_v25 = vmax.f32 %v1186_v33, 0.0  ;;  %v1155_v34 = vmul.f32 0.03125, %v1093_v12  ;;  %v2703_v0 = vadd.f32 %v2702_v62, %v2701_v2  ;;  %1388 = vmatprep.mubr.f32.mxu0 %v4721_v3  ;;  %1549 = vmatprep.mubr.f32.mxu1 %v4721_v3 }
 0x21e   :  { %2895 = vrsqrt.f32 %v1217_v16  ;;  %v2624_v59 = vpop.f32.mrb[84].mxu0  ;;  %v1627_v12 = vsub.f32 0.0, %v3836_v20 }
 0x21f   :  { %v2892_v1 = vpop.eup %2891  ;;  %v1218_v48 = vadd.f32 1e-05, %v1202_v25  ;;  %v1187_v14 = vsub.f32 %v1155_v34, %v1171_v39  ;;  %v1098_v29 = vadd.f32 %v2703_v0, %v2623_v31  ;;  %v2704_v63 = vpop.f32.mrb[84].mxu1  ;;  %v1173_v34 = vmul.f32 %v3892_v22, %v3892_v22 }
 0x220   :  { %v2625_v47 = vpop.f32.mrb[85].mxu0  ;;  %v2705_v61 = vpop.f32.mrb[85].mxu1  ;;  %2342 = vmatmul.mubr.msk.f32.gmra.mrb[104].mxu0 %vm1251_vm1, %v2892_v1  ;;  %2358 = vmatmul.mubr.msk.f32.gmra.mrb[104].mxu1 %vm1251_vm1, %v2892_v1  ;;  %v3896_v7 = vmul.f32 %v2892_v1, %v1626_v45  ;;  %v3904_v0 = vmul.f32 0.03125, %v3800_v57 }
 0x221   :  { %v2626_v35 = vadd.f32 %v2625_v47, %v2624_v59  ;;  %2897 = vrsqrt.f32 %v1218_v48  ;;  %v1203_v24 = vmax.f32 %v1187_v14, 0.0  ;;  %v1156_v16 = vmul.f32 0.03125, %v1098_v29  ;;  %1394 = vmatprep.mubr.f32.mxu0 %v4721_v3  ;;  %1555 = vmatprep.mubr.f32.mxu1 %v4721_v3 }
 0x222   :  { %v2706_v33 = vadd.f32 %v2705_v61, %v2704_v63  ;;  %v2627_v58 = vpop.f32.mrb[86].mxu0  ;;  %v1628_v29 = vsub.f32 0.0, %v3842_v9 }
 0x223   :  { %v2894_v2 = vpop.eup %2893  ;;  %v1219_v49 = vadd.f32 1e-05, %v1203_v24  ;;  %v1188_v39 = vsub.f32 %v1156_v16, %v1172_v8  ;;  %v2707_v62 = vpop.f32.mrb[86].mxu1  ;;  %v1174_v16 = vmul.f32 %v3904_v0, %v3904_v0 }
 0x224   :  { %v1103_v31 = vadd.f32 %v2706_v33, %v2626_v35  ;;  %v2628_v25 = vpop.f32.mrb[87].mxu0  ;;  %v2708_v59 = vpop.f32.mrb[87].mxu1  ;;  %2343 = vmatmul.mubr.msk.f32.gmra.mrb[106].mxu0 %vm1251_vm1, %v2894_v2  ;;  %2359 = vmatmul.mubr.msk.f32.gmra.mrb[106].mxu1 %vm1251_vm1, %v2894_v2  ;;  %v3908_v20 = vmul.f32 %v2894_v2, %v1627_v12  ;;  %v3916_v33 = vmul.f32 0.03125, %v3802_v54 }
 0x225   :  { %v2629_v45 = vadd.f32 %v2628_v25, %v2627_v58  ;;  %2899 = vrsqrt.f32 %v1219_v49  ;;  %v1204_v1 = vmax.f32 %v1188_v39, 0.0  ;;  %v2709_v14 = vadd.f32 %v2708_v59, %v2707_v62  ;;  %1400 = vmatprep.mubr.f32.mxu0 %v4721_v3  ;;  %1561 = vmatprep.mubr.f32.mxu1 %v4721_v3 }
 0x226   :  { %v1157_v48 = vmul.f32 0.03125, %v1103_v31  ;;  %v2630_v57 = vpop.f32.mrb[88].mxu0  ;;  %v1629_v31 = vsub.f32 0.0, %v3856_v28 }
 0x227   :  { %v1220_v47 = vadd.f32 1e-05, %v1204_v1  ;;  %v1108_v35 = vadd.f32 %v2709_v14, %v2629_v45  ;;  %v2710_v61 = vpop.f32.mrb[88].mxu1  ;;  %v2631_v24 = vpop.f32.mrb[89].mxu0  ;;  %v3928_v14 = vmul.f32 0.03125, %v3804_v52 }
 0x228   :  { %v2896_v63 = vpop.eup %2895  ;;  %v1189_v8 = vsub.f32 %v1157_v48, %v1173_v34  ;;  %v2632_v12 = vadd.f32 %v2631_v24, %v2630_v57  ;;  %v2711_v58 = vpop.f32.mrb[89].mxu1  ;;  %v1175_v48 = vmul.f32 %v3916_v33, %v3916_v33 }
 0x229   :  { %2344 = vmatmul.mubr.msk.f32.gmra.mrb[108].mxu0 %vm1251_vm1, %v2896_v63  ;;  %2360 = vmatmul.mubr.msk.f32.gmra.mrb[108].mxu1 %vm1251_vm1, %v2896_v63  ;;  %v3920_v9 = vmul.f32 %v2896_v63, %v1628_v29  ;;  %2901 = vrsqrt.f32 %v1220_v47  ;;  %v1158_v49 = vmul.f32 0.03125, %v1108_v35  ;;  %v2712_v39 = vadd.f32 %v2711_v58, %v2710_v61 }
 0x22a   :  { %v1205_v2 = vmax.f32 %v1189_v8, 0.0  ;;  %1406 = vmatprep.mubr.f32.mxu0 %v4721_v3  ;;  %1567 = vmatprep.mubr.f32.mxu1 %v4721_v3  ;;  %v2633_v54 = vpop.f32.mrb[90].mxu0  ;;  %v1630_v35 = vsub.f32 0.0, %v3868_v11 }
 0x22b   :  { %v2898_v62 = vpop.eup %2897  ;;  %v1190_v34 = vsub.f32 %v1158_v49, %v1174_v16  ;;  %v1113_v45 = vadd.f32 %v2712_v39, %v2632_v12  ;;  %v2713_v59 = vpop.f32.mrb[90].mxu1  ;;  %v1176_v49 = vmul.f32 %v3928_v14, %v3928_v14  ;;  %v3940_v39 = vmul.f32 0.03125, %v3806_v51 }
 0x22c   :  { %v1221_v25 = vadd.f32 1e-05, %v1205_v2  ;;  %v2634_v1 = vpop.f32.mrb[91].mxu0  ;;  %v2714_v57 = vpop.f32.mrb[91].mxu1  ;;  %v3932_v28 = vmul.f32 %v2898_v62, %v1629_v31 }
 0x22d   :  { %v2635_v29 = vadd.f32 %v2634_v1, %v2633_v54  ;;  %2345 = vmatmul.mubr.msk.f32.gmra.mrb[110].mxu0 %vm1251_vm1, %v2898_v62  ;;  %2361 = vmatmul.mubr.msk.f32.gmra.mrb[110].mxu1 %vm1251_vm1, %v2898_v62  ;;  %v1206_v63 = vmax.f32 %v1190_v34, 0.0  ;;  %v1159_v47 = vmul.f32 0.03125, %v1113_v45  ;;  %v2715_v8 = vadd.f32 %v2714_v57, %v2713_v59 }
 0x22e   :  { %2903 = vrsqrt.f32 %v1221_v25  ;;  %1412 = vmatprep.mubr.f32.mxu0 %v4721_v3  ;;  %1573 = vmatprep.mubr.f32.mxu1 %v4721_v3  ;;  %v2636_v52 = vpop.f32.mrb[92].mxu0  ;;  %v1631_v45 = vsub.f32 0.0, %v3880_v21 }
 0x22f   :  { %v2900_v61 = vpop.eup %2899  ;;  %v1222_v24 = vadd.f32 1e-05, %v1206_v63  ;;  %v1191_v16 = vsub.f32 %v1159_v47, %v1175_v48  ;;  %v1118_v12 = vadd.f32 %v2715_v8, %v2635_v29  ;;  %v2716_v58 = vpop.f32.mrb[92].mxu1  ;;  %v1177_v47 = vmul.f32 %v3940_v39, %v3940_v39 }
 0x230   :  { %v2637_v2 = vpop.f32.mrb[93].mxu0  ;;  %v2717_v54 = vpop.f32.mrb[93].mxu1  ;;  %v3944_v11 = vmul.f32 %v2900_v61, %v1630_v35  ;;  %v3952_v8 = vmul.f32 0.03125, %v3808_v50 }
 0x231   :  { %v2638_v31 = vadd.f32 %v2637_v2, %v2636_v52  ;;  %2346 = vmatmul.mubr.msk.f32.gmra.mrb[112].mxu0 %vm1251_vm1, %v2900_v61  ;;  %2362 = vmatmul.mubr.msk.f32.gmra.mrb[112].mxu1 %vm1251_vm1, %v2900_v61  ;;  %2905 = vrsqrt.f32 %v1222_v24  ;;  %v1207_v62 = vmax.f32 %v1191_v16, 0.0  ;;  %v1160_v25 = vmul.f32 0.03125, %v1118_v12 }
 0x232   :  { %v2718_v34 = vadd.f32 %v2717_v54, %v2716_v58  ;;  %1418 = vmatprep.mubr.f32.mxu0 %v4721_v3  ;;  %1579 = vmatprep.mubr.f32.mxu1 %v4721_v3  ;;  %v2639_v51 = vpop.f32.mrb[94].mxu0  ;;  %v1632_v12 = vsub.f32 0.0, %v3892_v22  ;;  %v1178_v54 = vmul.f32 %v3952_v8, %v3952_v8  ;;  %v1633_v22 = vsub.f32 0.0, %v3904_v0 }
 0x233   :  { %v2902_v59 = vpop.eup %2901  ;;  %v1223_v1 = vadd.f32 1e-05, %v1207_v62  ;;  %v1192_v48 = vsub.f32 %v1160_v25, %v1176_v49  ;;  %v2719_v57 = vpop.f32.mrb[94].mxu1 }
 0x234   :  { %v1123_v29 = vadd.f32 %v2718_v34, %v2638_v31  ;;  %v2640_v63 = vpop.f32.mrb[95].mxu0  ;;  %v2720_v52 = vpop.f32.mrb[95].mxu1  ;;  %v3956_v21 = vmul.f32 %v2902_v59, %v1631_v45 }
 0x235   :  { %v2641_v35 = vadd.f32 %v2640_v63, %v2639_v51  ;;  %2347 = vmatmul.mubr.msk.f32.gmra.mrb[114].mxu0 %vm1251_vm1, %v2902_v59  ;;  %2363 = vmatmul.mubr.msk.f32.gmra.mrb[114].mxu1 %vm1251_vm1, %v2902_v59  ;;  %2907 = vrsqrt.f32 %v1223_v1  ;;  %v1208_v61 = vmax.f32 %v1192_v48, 0.0  ;;  %v2721_v16 = vadd.f32 %v2720_v52, %v2719_v57 }
 0x236   :  { %v1161_v24 = vmul.f32 0.03125, %v1123_v29  ;;  %1424 = vmatprep.mubr.f32.mxu0 %v4721_v3  ;;  %1585 = vmatprep.mubr.f32.mxu1 %v4721_v3  ;;  %v1634_v48 = vsub.f32 0.0, %v3916_v33  ;;  %v1635_v63 = vsub.f32 0.0, %v3928_v14  ;;  %v1637_v14 = vsub.f32 0.0, %v3952_v8 }
 0x237   :  { %v1224_v58 = vadd.f32 1e-05, %v1208_v61  ;;  %v1128_v49 = vadd.f32 %v2721_v16, %v2641_v35  ;;  %v1636_v35 = vsub.f32 0.0, %v3940_v39 }
 0x238   :  { %v2904_v50 = vpop.eup %2903  ;;  %v1193_v2 = vsub.f32 %v1161_v24, %v1177_v47 }
 0x239   :  { %2348 = vmatmul.mubr.msk.f32.gmra.mrb[116].mxu0 %vm1251_vm1, %v2904_v50  ;;  %2364 = vmatmul.mubr.msk.f32.gmra.mrb[116].mxu1 %vm1251_vm1, %v2904_v50  ;;  %v3963_v31 = vmul.f32 %v2904_v50, %v1632_v12  ;;  %2909 = vrsqrt.f32 %v1224_v58  ;;  %v1162_v25 = vmul.f32 0.03125, %v1128_v49 }
 0x23a   :  { %v1209_v62 = vmax.f32 %v1193_v2, 0.0  ;;  %1430 = vmatprep.mubr.f32.mxu0 %v4721_v3  ;;  %1591 = vmatprep.mubr.f32.mxu1 %v4721_v3 }
 0x23b   :  { %v2906_v34 = vpop.eup %2905  ;;  %v1194_v51 = vsub.f32 %v1162_v25, %v1178_v54 }
 0x23c   :  { %v1225_v45 = vadd.f32 1e-05, %v1209_v62  ;;  %v3972_v59 = vmul.f32 %v2906_v34, %v1633_v22 }
 0x23d   :  { %2349 = vmatmul.mubr.msk.f32.gmra.mrb[118].mxu0 %vm1251_vm1, %v2906_v34  ;;  %2365 = vmatmul.mubr.msk.f32.gmra.mrb[118].mxu1 %vm1251_vm1, %v2906_v34  ;;  %v1210_v1 = vmax.f32 %v1194_v51, 0.0 }
 0x23e   :  { %2911 = vrsqrt.f32 %v1225_v45  ;;  %1436 = vmatprep.mubr.f32.mxu0 %v4721_v3  ;;  %1597 = vmatprep.mubr.f32.mxu1 %v4721_v3 }
 0x23f   :  { %v2908_v29 = vpop.eup %2907  ;;  %v1226_v57 = vadd.f32 1e-05, %v1210_v1 }
 0x240   :  { %v3979_v0 = vmul.f32 %v2908_v29, %v1634_v48 }
 0x241   :  { %2350 = vmatmul.mubr.msk.f32.gmra.mrb[120].mxu0 %vm1251_vm1, %v2908_v29  ;;  %2366 = vmatmul.mubr.msk.f32.gmra.mrb[120].mxu1 %vm1251_vm1, %v2908_v29  ;;  %2913 = vrsqrt.f32 %v1226_v57 }
 0x242   :  { %1442 = vmatprep.mubr.f32.mxu0 %v4721_v3  ;;  %1603 = vmatprep.mubr.f32.mxu1 %v4721_v3 }
 0x243   :  { %v2910_v47 = vpop.eup %2909 }
 0x244   :  { %v3986_v33 = vmul.f32 %v2910_v47, %v1635_v63 }
 0x245   :  { %2351 = vmatmul.mubr.msk.f32.gmra.mrb[122].mxu0 %vm1251_vm1, %v2910_v47  ;;  %2367 = vmatmul.mubr.msk.f32.gmra.mrb[122].mxu1 %vm1251_vm1, %v2910_v47 }
 0x246   :  { %1448 = vmatprep.mubr.f32.mxu0 %v4721_v3  ;;  %1609 = vmatprep.mubr.f32.mxu1 %v4721_v3 }
 0x248   :  { %v2912_v52 = vpop.eup %2911 }
 0x249   :  { %2352 = vmatmul.mubr.msk.f32.gmra.mrb[124].mxu0 %vm1251_vm1, %v2912_v52  ;;  %2368 = vmatmul.mubr.msk.f32.gmra.mrb[124].mxu1 %vm1251_vm1, %v2912_v52  ;;  %v3993_v61 = vmul.f32 %v2912_v52, %v1636_v35 }
 0x24a   :  { %1454 = vmatprep.mubr.f32.mxu0 %v4721_v3  ;;  %1615 = vmatprep.mubr.f32.mxu1 %v4721_v3 }
 0x24b   :  { %v2914_v24 = vpop.eup %2913 }
 0x24c   :  { %v4000_v16 = vmul.f32 %v2914_v24, %v1637_v14 }
 0x24d   :  { %2353 = vmatmul.mubr.msk.f32.gmra.mrb[126].mxu0 %vm1251_vm1, %v2914_v24  ;;  %2369 = vmatmul.mubr.msk.f32.gmra.mrb[126].mxu1 %vm1251_vm1, %v2914_v24 }
 0x24e   :  { %1766 = vmatprep.mubr.f32.mxu0 %v4721_v3  ;;  %1927 = vmatprep.mubr.f32.mxu1 %v4721_v3 }
 0x251   :  { %2370 = vmatmul.mubr.msk.f32.vlgmr.msra.gmra.mrb[128].mxu0 %vm1251_vm1, %v3846_v13  ;;  %2386 = vmatmul.mubr.msk.f32.vlgmr.msra.gmra.mrb[128].mxu1 %vm1251_vm1, %v3846_v13 }
 0x252   :  { %1772 = vmatprep.mubr.f32.mxu0 %v4721_v3  ;;  %1933 = vmatprep.mubr.f32.mxu1 %v4721_v3 }
 0x255   :  { %2371 = vmatmul.mubr.msk.f32.gmra.mrb[130].mxu0 %vm1251_vm1, %v3860_v32  ;;  %2387 = vmatmul.mubr.msk.f32.gmra.mrb[130].mxu1 %vm1251_vm1, %v3860_v32 }
 0x256   :  { %1778 = vmatprep.mubr.f32.mxu0 %v4721_v3  ;;  %1939 = vmatprep.mubr.f32.mxu1 %v4721_v3 }
 0x259   :  { %2372 = vmatmul.mubr.msk.f32.gmra.mrb[132].mxu0 %vm1251_vm1, %v3872_v26  ;;  %2388 = vmatmul.mubr.msk.f32.gmra.mrb[132].mxu1 %vm1251_vm1, %v3872_v26 }
 0x25a   :  { %1784 = vmatprep.mubr.f32.mxu0 %v4721_v3  ;;  %1945 = vmatprep.mubr.f32.mxu1 %v4721_v3 }
 0x25d   :  { %2373 = vmatmul.mubr.msk.f32.gmra.mrb[134].mxu0 %vm1251_vm1, %v3884_v15  ;;  %2389 = vmatmul.mubr.msk.f32.gmra.mrb[134].mxu1 %vm1251_vm1, %v3884_v15  ;;  %v4722_v15 = vld [vmem:[#allocation2_spill] sm:$0xff] }
 0x25e   :  { %1790 = vmatprep.mubr.f32.mxu0 %v4721_v3  ;;  %1951 = vmatprep.mubr.f32.mxu1 %v4721_v3 }
 0x261   :  { %2374 = vmatmul.mubr.msk.f32.gmra.mrb[136].mxu0 %vm1251_vm1, %v3896_v7  ;;  %2390 = vmatmul.mubr.msk.f32.gmra.mrb[136].mxu1 %vm1251_vm1, %v3896_v7 }
 0x262   :  { %1796 = vmatprep.mubr.f32.mxu0 %v4721_v3  ;;  %1957 = vmatprep.mubr.f32.mxu1 %v4721_v3 }
 0x265   :  { %2375 = vmatmul.mubr.msk.f32.gmra.mrb[138].mxu0 %vm1251_vm1, %v3908_v20  ;;  %2391 = vmatmul.mubr.msk.f32.gmra.mrb[138].mxu1 %vm1251_vm1, %v3908_v20 }
 0x266   :  { %1802 = vmatprep.mubr.f32.mxu0 %v4721_v3  ;;  %1963 = vmatprep.mubr.f32.mxu1 %v4721_v3 }
 0x269   :  { %2376 = vmatmul.mubr.msk.f32.gmra.mrb[140].mxu0 %vm1251_vm1, %v3920_v9  ;;  %2392 = vmatmul.mubr.msk.f32.gmra.mrb[140].mxu1 %vm1251_vm1, %v3920_v9 }
 0x26a   :  { %1808 = vmatprep.mubr.f32.mxu0 %v4721_v3  ;;  %1969 = vmatprep.mubr.f32.mxu1 %v4721_v3 }
 0x26d   :  { %2377 = vmatmul.mubr.msk.f32.gmra.mrb[142].mxu0 %vm1251_vm1, %v3932_v28  ;;  %2393 = vmatmul.mubr.msk.f32.gmra.mrb[142].mxu1 %vm1251_vm1, %v3932_v28  ;;  %v4723_v28 = vld [vmem:[#allocation3_spill] sm:$0xff] }
 0x26e   :  { %1814 = vmatprep.mubr.f32.mxu0 %v4721_v3  ;;  %1975 = vmatprep.mubr.f32.mxu1 %v4721_v3 }
 0x271   :  { %2378 = vmatmul.mubr.msk.f32.gmra.mrb[144].mxu0 %vm1251_vm1, %v3944_v11  ;;  %2394 = vmatmul.mubr.msk.f32.gmra.mrb[144].mxu1 %vm1251_vm1, %v3944_v11 }
 0x272   :  { %1820 = vmatprep.mubr.f32.mxu0 %v4721_v3  ;;  %1981 = vmatprep.mubr.f32.mxu1 %v4721_v3 }
 0x275   :  { %2379 = vmatmul.mubr.msk.f32.gmra.mrb[146].mxu0 %vm1251_vm1, %v3956_v21  ;;  %2395 = vmatmul.mubr.msk.f32.gmra.mrb[146].mxu1 %vm1251_vm1, %v3956_v21 }
 0x276   :  { %1826 = vmatprep.mubr.f32.mxu0 %v4721_v3  ;;  %1987 = vmatprep.mubr.f32.mxu1 %v4721_v3 }
 0x279   :  { %2380 = vmatmul.mubr.msk.f32.gmra.mrb[148].mxu0 %vm1251_vm1, %v3963_v31  ;;  %2396 = vmatmul.mubr.msk.f32.gmra.mrb[148].mxu1 %vm1251_vm1, %v3963_v31 }
 0x27a   :  { %1832 = vmatprep.mubr.f32.mxu0 %v4721_v3  ;;  %1993 = vmatprep.mubr.f32.mxu1 %v4721_v3 }
 0x27d   :  { %2381 = vmatmul.mubr.msk.f32.gmra.mrb[150].mxu0 %vm1251_vm1, %v3972_v59  ;;  %2397 = vmatmul.mubr.msk.f32.gmra.mrb[150].mxu1 %vm1251_vm1, %v3972_v59 }
 0x27e   :  { %1838 = vmatprep.mubr.f32.mxu0 %v4721_v3  ;;  %1999 = vmatprep.mubr.f32.mxu1 %v4721_v3 }
 0x281   :  { %2382 = vmatmul.mubr.msk.f32.gmra.mrb[152].mxu0 %vm1251_vm1, %v3979_v0  ;;  %2398 = vmatmul.mubr.msk.f32.gmra.mrb[152].mxu1 %vm1251_vm1, %v3979_v0 }
 0x282   :  { %1844 = vmatprep.mubr.f32.mxu0 %v4721_v3  ;;  %2005 = vmatprep.mubr.f32.mxu1 %v4721_v3 }
 0x285   :  { %2383 = vmatmul.mubr.msk.f32.gmra.mrb[154].mxu0 %vm1251_vm1, %v3986_v33  ;;  %2399 = vmatmul.mubr.msk.f32.gmra.mrb[154].mxu1 %vm1251_vm1, %v3986_v33 }
 0x286   :  { %1850 = vmatprep.mubr.f32.mxu0 %v4721_v3  ;;  %2011 = vmatprep.mubr.f32.mxu1 %v4721_v3 }
 0x289   :  { %2384 = vmatmul.mubr.msk.f32.gmra.mrb[156].mxu0 %vm1251_vm1, %v3993_v61  ;;  %2400 = vmatmul.mubr.msk.f32.gmra.mrb[156].mxu1 %vm1251_vm1, %v3993_v61 }
 0x28a   :  { %1856 = vmatprep.mubr.f32.mxu0 %v4721_v3  ;;  %2017 = vmatprep.mubr.f32.mxu1 %v4721_v3  ;;  %v4724_v3 = vld [vmem:[#allocation4_spill] sm:$0xff] }
 0x28d   :  { %2385 = vmatmul.mubr.msk.f32.gmra.mrb[158].mxu0 %vm1251_vm1, %v4000_v16  ;;  %2401 = vmatmul.mubr.msk.f32.gmra.mrb[158].mxu1 %vm1251_vm1, %v4000_v16  ;;  %v4726_v16 = vld [vmem:[#allocation6_spill] sm:$0xff] }
 0x2e3   :  { %v1366_v13 = vpop.f32.mrb[96].mxu0  ;;  %v1527_v32 = vpop.f32.mrb[96].mxu1 }
 0x2e4   :  { %v4099_v26 = vmul.f32 %v1366_v13, %v3396_v27  ;;  %v4102_v7 = vmul.f32 %v1527_v32, %v4722_v15  ;;  %v1368_v20 = vpop.f32.mrb[97].mxu0  ;;  %v1529_v9 = vpop.f32.mrb[97].mxu1 }
 0x2e5   :  { %v4105_v39 = vmul.f32 %v1368_v20, %v4723_v28  ;;  %v4108_v11 = vmul.f32 %v1529_v9, %v4724_v3  ;;  %v4728_v20 = vld [vmem:[#allocation8_spill] sm:$0xff] }
 0x2e7   :  { %v1372_v8 = vpop.f32.mrb[98].mxu0  ;;  %v1533_v21 = vpop.f32.mrb[98].mxu1 }
 0x2e8   :  { %v4111_v12 = vmul.f32 %v1372_v8, %v3409_v37  ;;  %v4114_v50 = vmul.f32 %v1533_v21, %v3412_v38  ;;  %v1374_v27 = vpop.f32.mrb[99].mxu0  ;;  %v1535_v58 = vpop.f32.mrb[99].mxu1  ;;  %v4730_v8 = vld [vmem:[#allocation10_spill] sm:$0xff] }
 0x2e9   :  { %v4117_v2 = vmul.f32 %v1374_v27, %v3414_v40  ;;  %v4120_v49 = vmul.f32 %v1535_v58, %v3417_v43 }
 0x2eb   :  { %v1378_v31 = vpop.f32.mrb[100].mxu0  ;;  %v1539_v54 = vpop.f32.mrb[100].mxu1 }
 0x2ec   :  { %v4123_v62 = vmul.f32 %v1378_v31, %v3424_v36  ;;  %v4126_v25 = vmul.f32 %v1539_v54, %v3427_v41  ;;  %v1380_v37 = vpop.f32.mrb[101].mxu0  ;;  %v1541_v22 = vpop.f32.mrb[101].mxu1  ;;  %v4731_v31 = vld [vmem:[#allocation11_spill] sm:$0xff] }
 0x2ed   :  { %v4129_v38 = vmul.f32 %v1380_v37, %v3429_v44  ;;  %v4132_v34 = vmul.f32 %v1541_v22, %v3433_v42  ;;  %v4732_v37 = vld [vmem:[#allocation12_spill] sm:$0xff] }
 0x2ef   :  { %v1384_v40 = vpop.f32.mrb[102].mxu0  ;;  %v1545_v45 = vpop.f32.mrb[102].mxu1 }
 0x2f0   :  { %v4135_v43 = vmul.f32 %v1384_v40, %v3440_v46  ;;  %v4138_v51 = vmul.f32 %v1545_v45, %v3443_v53  ;;  %v1386_v36 = vpop.f32.mrb[103].mxu0  ;;  %v1547_v59 = vpop.f32.mrb[103].mxu1 }
 0x2f1   :  { %v4141_v41 = vmul.f32 %v1386_v36, %v3445_v55  ;;  %v4144_v1 = vmul.f32 %v1547_v59, %v3449_v56  ;;  %v4733_v36 = vld [vmem:[#allocation13_spill] sm:$0xff] }
 0x2f3   :  { %v1390_v44 = vpop.f32.mrb[104].mxu0  ;;  %v1551_v48 = vpop.f32.mrb[104].mxu1 }
 0x2f4   :  { %v4147_v42 = vmul.f32 %v1390_v44, %v3456_v60  ;;  %v4150_v29 = vmul.f32 %v1551_v48, %v3459_v4  ;;  %v1392_v46 = vpop.f32.mrb[105].mxu0  ;;  %v1553_v57 = vpop.f32.mrb[105].mxu1  ;;  %v4734_v44 = vld [vmem:[#allocation14_spill] sm:$0xff] }
 0x2f5   :  { %v4153_v53 = vmul.f32 %v1392_v46, %v3461_v5  ;;  %v4156_v0 = vmul.f32 %v1553_v57, %v3465_v6 }
 0x2f7   :  { %v1396_v55 = vpop.f32.mrb[106].mxu0  ;;  %v1557_v63 = vpop.f32.mrb[106].mxu1 }
 0x2f8   :  { %v4159_v56 = vmul.f32 %v1396_v55, %v3472_v10  ;;  %v4162_v47 = vmul.f32 %v1557_v63, %v3475_v17  ;;  %v1398_v60 = vpop.f32.mrb[107].mxu0  ;;  %v1559_v33 = vpop.f32.mrb[107].mxu1  ;;  %v4725_v17 = vld [vmem:[#allocation5_spill] sm:$0xff]  ;;  %v4735_v55 = vld [vmem:[#allocation15_spill] sm:$0xff] }
 0x2f9   :  { %v4165_v4 = vmul.f32 %v1398_v60, %v3477_v18  ;;  %v4168_v35 = vmul.f32 %v1559_v33, %v3481_v19  ;;  %v4727_v19 = vld [vmem:[#allocation7_spill] sm:$0xff]  ;;  %v4736_v60 = vld [vmem:[#allocation16_spill] sm:$0xff] }
 0x2fc   :  { %v1402_v5 = vpop.f32.mrb[108].mxu0  ;;  %v1563_v52 = vpop.f32.mrb[108].mxu1 }
 0x2fd   :  { %v4171_v6 = vmul.f32 %v1402_v5, %v3488_v23  ;;  %v4174_v61 = vmul.f32 %v1563_v52, %v3491_v30  ;;  %v1404_v10 = vpop.f32.mrb[109].mxu0  ;;  %v1565_v14 = vpop.f32.mrb[109].mxu1  ;;  %v4729_v30 = vld [vmem:[#allocation9_spill] sm:$0xff] }
 0x2fe   :  { %v4177_v24 = vmul.f32 %v1404_v10, %v4725_v17  ;;  %v4180_v13 = vmul.f32 %v1565_v14, %v4726_v16  ;;  %v4737_v10 = vld [vmem:[#allocation17_spill] sm:$0xff]  ;;  %v4738_v17 = vld [vmem:[#allocation18_spill] sm:$0xff] }
 0x300   :  { %v1408_v18 = vpop.f32.mrb[110].mxu0  ;;  %v1569_v32 = vpop.f32.mrb[110].mxu1 }
 0x301   :  { %v4183_v15 = vmul.f32 %v1408_v18, %v4727_v19  ;;  %v4186_v9 = vmul.f32 %v1569_v32, %v4728_v20  ;;  %v1410_v23 = vpop.f32.mrb[111].mxu0  ;;  %v1571_v28 = vpop.f32.mrb[111].mxu1  ;;  %v4739_v19 = vld [vmem:[#allocation19_spill] sm:$0xff] }
 0x302   :  { %v4189_v3 = vmul.f32 %v1410_v23, %v4729_v30  ;;  %v4192_v21 = vmul.f32 %v1571_v28, %v4730_v8  ;;  %v4740_v23 = vld [vmem:[#allocation20_spill] sm:$0xff] }
 0x304   :  { %v1414_v27 = vpop.f32.mrb[112].mxu0  ;;  %v1575_v58 = vpop.f32.mrb[112].mxu1 }
 0x305   :  { %v4195_v54 = vmul.f32 %v1414_v27, %v4731_v31  ;;  %v4198_v22 = vmul.f32 %v1575_v58, %v4732_v37  ;;  %v1416_v40 = vpop.f32.mrb[113].mxu0  ;;  %v1577_v45 = vpop.f32.mrb[113].mxu1  ;;  %v4741_v27 = vld [vmem:[#allocation21_spill] sm:$0xff]  ;;  %v4743_v31 = vld [vmem:[#allocation22_spill] sm:$0xff] }
 0x306   :  { %v4201_v59 = vmul.f32 %v1416_v40, %v4733_v36  ;;  %v4204_v48 = vmul.f32 %v1577_v45, %v4734_v44  ;;  %v4745_v36 = vld [vmem:[#allocation23_spill] sm:$0xff] }
 0x308   :  { %v1420_v46 = vpop.f32.mrb[114].mxu0  ;;  %v1581_v57 = vpop.f32.mrb[114].mxu1 }
 0x309   :  { %v4207_v63 = vmul.f32 %v1420_v46, %v4735_v55  ;;  %v4210_v33 = vmul.f32 %v1581_v57, %v4736_v60  ;;  %v1422_v5 = vpop.f32.mrb[115].mxu0  ;;  %v1583_v52 = vpop.f32.mrb[115].mxu1  ;;  %v4747_v46 = vld [vmem:[#allocation24_spill] sm:$0xff] }
 0x30a   :  { %v4213_v14 = vmul.f32 %v1422_v5, %v4737_v10  ;;  %v4216_v16 = vmul.f32 %v1583_v52, %v4738_v17  ;;  %v4749_v5 = vld [vmem:[#allocation25_spill] sm:$0xff]  ;;  %v4751_v10 = vld [vmem:[#allocation26_spill] sm:$0xff] }
 0x30c   :  { %v1426_v18 = vpop.f32.mrb[116].mxu0  ;;  %v1587_v32 = vpop.f32.mrb[116].mxu1 }
 0x30d   :  { %v4219_v20 = vmul.f32 %v1426_v18, %v4739_v19  ;;  %v4222_v28 = vmul.f32 %v1587_v32, %v4740_v23  ;;  %v1428_v30 = vpop.f32.mrb[117].mxu0  ;;  %v1589_v8 = vpop.f32.mrb[117].mxu1  ;;  %v4753_v19 = vld [vmem:[#allocation27_spill] sm:$0xff] }
 0x30e   :  { %v4225_v58 = vmul.f32 %v1428_v30, %v4741_v27  ;;  %v4228_v37 = vmul.f32 %v1589_v8, %v4743_v31  ;;  %v4755_v30 = vld [vmem:[#allocation28_spill] sm:$0xff] }
 0x310   :  { %4742 = vst [vmem:[#allocation2_spill] sm:$0xff] %v4225_v58  ;;  %4744 = vst [vmem:[#allocation3_spill] sm:$0xff] %v4228_v37  ;;  %v1432_v40 = vpop.f32.mrb[118].mxu0  ;;  %v1593_v45 = vpop.f32.mrb[118].mxu1 }
 0x311   :  { %v4231_v44 = vmul.f32 %v1432_v40, %v4745_v36  ;;  %v4234_v57 = vmul.f32 %v1593_v45, %v4747_v46  ;;  %v1434_v55 = vpop.f32.mrb[119].mxu0  ;;  %v1595_v60 = vpop.f32.mrb[119].mxu1  ;;  %v4757_v40 = vld [vmem:[#allocation29_spill] sm:$0xff]  ;;  %v4759_v36 = vld [vmem:[#allocation30_spill] sm:$0xff] }
 0x312   :  { %v4237_v52 = vmul.f32 %v1434_v55, %v4749_v5  ;;  %v4240_v17 = vmul.f32 %v1595_v60, %v4751_v10  ;;  %v2154_v55 = vlaneseq  ;;  %v4761_v10 = vld [vmem:[#allocation31_spill] sm:$0xff] }
 0x313   :  { %4746 = vst [vmem:[#allocation4_spill] sm:$0xff] %v4231_v44  ;;  %4748 = vst [vmem:[#allocation5_spill] sm:$0xff] %v4234_v57  ;;  %v4771_v57 = vld [vmem:[#allocation36_spill] sm:$0xff] }
 0x314   :  { %4750 = vst [vmem:[#allocation6_spill] sm:$0xff] %v4237_v52  ;;  %4752 = vst [vmem:[#allocation7_spill] sm:$0xff] %v4240_v17  ;;  %v1438_v18 = vpop.f32.mrb[120].mxu0  ;;  %v1599_v32 = vpop.f32.mrb[120].mxu1  ;;  %v4763_v52 = vld [vmem:[#allocation32_spill] sm:$0xff] }
 0x315   :  { %v4243_v23 = vmul.f32 %v1438_v18, %v4753_v19  ;;  %v4246_v8 = vmul.f32 %v1599_v32, %v4755_v30  ;;  %v1440_v27 = vpop.f32.mrb[121].mxu0  ;;  %v1601_v31 = vpop.f32.mrb[121].mxu1  ;;  %v4765_v30 = vld [vmem:[#allocation33_spill] sm:$0xff] }
 0x316   :  { %v4249_v45 = vmul.f32 %v1440_v27, %v4757_v40  ;;  %v4252_v46 = vmul.f32 %v1601_v31, %v4759_v36  ;;  %v2155_v40 = vshrl.u32 %v2154_v55, 7 }
 0x317   :  { %4754 = vst [vmem:[#allocation8_spill] sm:$0xff] %v4243_v23  ;;  %4756 = vst [vmem:[#allocation9_spill] sm:$0xff] %v4246_v8  ;;  %v4767_v23 = vld [vmem:[#allocation34_spill] sm:$0xff] }
 0x318   :  { %4758 = vst [vmem:[#allocation10_spill] sm:$0xff] %v4249_v45  ;;  %4760 = vst [vmem:[#allocation11_spill] sm:$0xff] %v4252_v46  ;;  %v1444_v5 = vpop.f32.mrb[122].mxu0  ;;  %v1605_v60 = vpop.f32.mrb[122].mxu1  ;;  %v4769_v46 = vld [vmem:[#allocation35_spill] sm:$0xff] }
 0x319   :  { %v4255_v17 = vmul.f32 %v1444_v5, %v4761_v10  ;;  %v4258_v18 = vmul.f32 %v1605_v60, %v4763_v52  ;;  %v1446_v19 = vpop.f32.mrb[123].mxu0  ;;  %v1607_v32 = vpop.f32.mrb[123].mxu1  ;;  %v4773_v60 = vld [vmem:[#allocation37_spill] sm:$0xff] }
 0x31a   :  { %v4261_v8 = vmul.f32 %v1446_v19, %v4765_v30  ;;  %v4264_v27 = vmul.f32 %v1607_v32, %v4767_v23  ;;  %v2156_v30 = vsub.s32 0, %v2155_v40  ;;  %v2164_v23 = vsub.s32 2, %v2155_v40 }
 0x31b   :  { %4762 = vst [vmem:[#allocation12_spill] sm:$0xff] %v4255_v17  ;;  %4764 = vst [vmem:[#allocation13_spill] sm:$0xff] %v4258_v18  ;;  %v4775_v17 = vld [vmem:[#allocation38_spill] sm:$0xff] }
 0x31c   :  { %4766 = vst [vmem:[#allocation14_spill] sm:$0xff] %v4261_v8  ;;  %4768 = vst [vmem:[#allocation15_spill] sm:$0xff] %v4264_v27  ;;  %v1450_v31 = vpop.f32.mrb[124].mxu0  ;;  %v1611_v36 = vpop.f32.mrb[124].mxu1 }
 0x31d   :  { %v4267_v45 = vmul.f32 %v1450_v31, %v4769_v46  ;;  %v4270_v5 = vmul.f32 %v1611_v36, %v4771_v57  ;;  %v1452_v10 = vpop.f32.mrb[125].mxu0  ;;  %v1613_v52 = vpop.f32.mrb[125].mxu1  ;;  %v2152_v46 = vld [vmem:[%s4625_s2] sm:$0xf]  ;;  %v2160_v31 = vsub.s32 1, %v2155_v40  ;;  %v4777_v57 = vld [vmem:[#allocation39_spill] sm:$0xff] }
 0x31e   :  { %v4273_v18 = vmul.f32 %v1452_v10, %v4773_v60  ;;  %v4276_v19 = vmul.f32 %v1613_v52, %v4775_v17  ;;  %v4779_v17 = vld [vmem:[#allocation41_spill] sm:$0xff]  ;;  %v4293_v8 = vrot.slane %v2152_v46, %v2156_v30  ;;  %v4295_v44 = vrot.slane %v2152_v46, %v2164_v23 }
 0x31f   :  { %4770 = vst [vmem:[#allocation16_spill] sm:$0xff] %v4267_v45  ;;  %4772 = vst [vmem:[#allocation17_spill] sm:$0xff] %v4270_v5  ;;  %v2168_v45 = vsub.s32 3, %v2155_v40  ;;  %v4778_v5 = vld [vmem:[#allocation40_spill] sm:$0xff]  ;;  %v4297_v58 = vrot.slane %v2152_v46, %v2160_v31 }
 0x320   :  { %4774 = vst [vmem:[#allocation18_spill] sm:$0xff] %v4273_v18  ;;  %4776 = vst [vmem:[#allocation19_spill] sm:$0xff] %v4276_v19  ;;  %v1456_v32 = vpop.f32.mrb[126].mxu0  ;;  %v1617_v55 = vpop.f32.mrb[126].mxu1  ;;  %v4780_v19 = vld [vmem:[#allocation42_spill] sm:$0xff] }
 0x321   :  { %v4282_v36 = vmul.f32 %v1456_v32, %v4777_v57  ;;  %v4285_v27 = vmul.f32 %v1617_v55, %v4778_v5  ;;  %v1458_v10 = vpop.f32.mrb[127].mxu0  ;;  %v1619_v60 = vpop.f32.mrb[127].mxu1  ;;  %v4299_v32 = vrot.slane %v2152_v46, %v2168_v45 }
 0x322   :  { %v4288_v52 = vmul.f32 %v1458_v10, %v4779_v17  ;;  %v4291_v18 = vmul.f32 %v1619_v60, %v4780_v19 }
 0x324   :  { %v1768_v37 = vpop.f32.mrb[128].mxu0  ;;  %v1929_v40 = vpop.f32.mrb[128].mxu1 }
 0x325   :  { %v2088_v5 = vadd.f32 %v4099_v26, %v1768_v37  ;;  %v2090_v55 = vadd.f32 %v4102_v7, %v1929_v40  ;;  %v1770_v57 = vpop.f32.mrb[129].mxu0  ;;  %v1931_v10 = vpop.f32.mrb[129].mxu1 }
 0x326   :  { %v2089_v17 = vadd.f32 %v4105_v39, %v1770_v57  ;;  %v2091_v19 = vadd.f32 %v4108_v11, %v1931_v10 }
 0x327   :  { %v2174_v30 = vadd.f32 %v4293_v8, %v2088_v5  ;;  %v2176_v23 = vadd.f32 %v4295_v44, %v2090_v55 }
 0x328   :  { %v2175_v60 = vadd.f32 %v4297_v58, %v2089_v17  ;;  %v2177_v31 = vadd.f32 %v4299_v32, %v2091_v19  ;;  %v1774_v45 = vpop.f32.mrb[130].mxu0  ;;  %v1935_v46 = vpop.f32.mrb[130].mxu1 }
 0x329   :  { %2238 = vst [vmem:[%s4626_s5] sm:$0xff] %v2174_v30  ;;  %2240 = vst [vmem:[%s4626_s5 + $0x10] sm:$0xff] %v2176_v23  ;;  %v2092_v26 = vadd.f32 %v4111_v12, %v1774_v45  ;;  %v2094_v7 = vadd.f32 %v4114_v50, %v1935_v46  ;;  %v1776_v39 = vpop.f32.mrb[131].mxu0  ;;  %v1937_v11 = vpop.f32.mrb[131].mxu1 }
 0x32a   :  { %2239 = vst [vmem:[%s4626_s5 + $0x8] sm:$0xff] %v2175_v60  ;;  %2241 = vst [vmem:[%s4626_s5 + $0x18] sm:$0xff] %v2177_v31  ;;  %v2093_v37 = vadd.f32 %v4117_v2, %v1776_v39  ;;  %v2095_v40 = vadd.f32 %v4120_v49, %v1937_v11 }
 0x32b   :  { %v2178_v5 = vadd.f32 %v4293_v8, %v2092_v26  ;;  %v2180_v12 = vadd.f32 %v4295_v44, %v2094_v7 }
 0x32c   :  { %v2179_v50 = vadd.f32 %v4297_v58, %v2093_v37  ;;  %v2181_v55 = vadd.f32 %v4299_v32, %v2095_v40  ;;  %v1780_v57 = vpop.f32.mrb[132].mxu0  ;;  %v1941_v10 = vpop.f32.mrb[132].mxu1 }
 0x32d   :  { %2242 = vst [vmem:[%s4626_s5 + $0x20] sm:$0xff] %v2178_v5  ;;  %2244 = vst [vmem:[%s4626_s5 + $0x30] sm:$0xff] %v2180_v12  ;;  %v2096_v2 = vadd.f32 %v4123_v62, %v1780_v57  ;;  %v2098_v49 = vadd.f32 %v4126_v25, %v1941_v10  ;;  %v1782_v17 = vpop.f32.mrb[133].mxu0  ;;  %v1943_v19 = vpop.f32.mrb[133].mxu1 }
 0x32e   :  { %2243 = vst [vmem:[%s4626_s5 + $0x28] sm:$0xff] %v2179_v50  ;;  %2245 = vst [vmem:[%s4626_s5 + $0x38] sm:$0xff] %v2181_v55  ;;  %v2097_v30 = vadd.f32 %v4129_v38, %v1782_v17  ;;  %v2099_v23 = vadd.f32 %v4132_v34, %v1943_v19 }
 0x32f   :  { %v2182_v60 = vadd.f32 %v4293_v8, %v2096_v2  ;;  %v2184_v62 = vadd.f32 %v4295_v44, %v2098_v49 }
 0x330   :  { %v2183_v25 = vadd.f32 %v4297_v58, %v2097_v30  ;;  %v2185_v31 = vadd.f32 %v4299_v32, %v2099_v23  ;;  %v1786_v45 = vpop.f32.mrb[134].mxu0  ;;  %v1947_v46 = vpop.f32.mrb[134].mxu1 }
 0x331   :  { %2246 = vst [vmem:[%s4626_s5 + $0x40] sm:$0xff] %v2182_v60  ;;  %2248 = vst [vmem:[%s4626_s5 + $0x50] sm:$0xff] %v2184_v62  ;;  %v2100_v38 = vadd.f32 %v4135_v43, %v1786_v45  ;;  %v2102_v34 = vadd.f32 %v4138_v51, %v1947_v46  ;;  %v1788_v26 = vpop.f32.mrb[135].mxu0  ;;  %v1949_v7 = vpop.f32.mrb[135].mxu1 }
 0x332   :  { %2247 = vst [vmem:[%s4626_s5 + $0x48] sm:$0xff] %v2183_v25  ;;  %2249 = vst [vmem:[%s4626_s5 + $0x58] sm:$0xff] %v2185_v31  ;;  %v2101_v39 = vadd.f32 %v4141_v41, %v1788_v26  ;;  %v2103_v11 = vadd.f32 %v4144_v1, %v1949_v7 }
 0x333   :  { %v2186_v37 = vadd.f32 %v4293_v8, %v2100_v38  ;;  %v2188_v43 = vadd.f32 %v4295_v44, %v2102_v34 }
 0x334   :  { %v2187_v51 = vadd.f32 %v4297_v58, %v2101_v39  ;;  %v2189_v40 = vadd.f32 %v4299_v32, %v2103_v11  ;;  %v1792_v5 = vpop.f32.mrb[136].mxu0  ;;  %v1953_v12 = vpop.f32.mrb[136].mxu1 }
 0x335   :  { %2250 = vst [vmem:[%s4626_s5 + $0x60] sm:$0xff] %v2186_v37  ;;  %2252 = vst [vmem:[%s4626_s5 + $0x70] sm:$0xff] %v2188_v43  ;;  %v2104_v41 = vadd.f32 %v4147_v42, %v1792_v5  ;;  %v2106_v1 = vadd.f32 %v4150_v29, %v1953_v12  ;;  %v1794_v50 = vpop.f32.mrb[137].mxu0  ;;  %v1955_v55 = vpop.f32.mrb[137].mxu1 }
 0x336   :  { %2251 = vst [vmem:[%s4626_s5 + $0x68] sm:$0xff] %v2187_v51  ;;  %2253 = vst [vmem:[%s4626_s5 + $0x78] sm:$0xff] %v2189_v40  ;;  %v2105_v57 = vadd.f32 %v4153_v53, %v1794_v50  ;;  %v2107_v10 = vadd.f32 %v4156_v0, %v1955_v55 }
 0x337   :  { %v2190_v2 = vadd.f32 %v4293_v8, %v2104_v41  ;;  %v2192_v42 = vadd.f32 %v4295_v44, %v2106_v1 }
 0x338   :  { %v2191_v29 = vadd.f32 %v4297_v58, %v2105_v57  ;;  %v2193_v49 = vadd.f32 %v4299_v32, %v2107_v10  ;;  %v1798_v17 = vpop.f32.mrb[138].mxu0  ;;  %v1959_v19 = vpop.f32.mrb[138].mxu1 }
 0x339   :  { %2254 = vst [vmem:[%s4626_s5 + $0x80] sm:$0xff] %v2190_v2  ;;  %2256 = vst [vmem:[%s4626_s5 + $0x90] sm:$0xff] %v2192_v42  ;;  %v2108_v53 = vadd.f32 %v4159_v56, %v1798_v17  ;;  %v2110_v0 = vadd.f32 %v4162_v47, %v1959_v19  ;;  %v1800_v30 = vpop.f32.mrb[139].mxu0  ;;  %v1961_v23 = vpop.f32.mrb[139].mxu1 }
 0x33a   :  { %2255 = vst [vmem:[%s4626_s5 + $0x88] sm:$0xff] %v2191_v29  ;;  %2257 = vst [vmem:[%s4626_s5 + $0x98] sm:$0xff] %v2193_v49  ;;  %v2109_v60 = vadd.f32 %v4165_v4, %v1800_v30  ;;  %v2111_v62 = vadd.f32 %v4168_v35, %v1961_v23 }
 0x33b   :  { %v2194_v25 = vadd.f32 %v4293_v8, %v2108_v53  ;;  %v2196_v56 = vadd.f32 %v4295_v44, %v2110_v0 }
 0x33c   :  { %v2195_v47 = vadd.f32 %v4297_v58, %v2109_v60  ;;  %v2197_v31 = vadd.f32 %v4299_v32, %v2111_v62  ;;  %v1804_v45 = vpop.f32.mrb[140].mxu0  ;;  %v1965_v46 = vpop.f32.mrb[140].mxu1 }
 0x33d   :  { %2258 = vst [vmem:[%s4626_s5 + $0xa0] sm:$0xff] %v2194_v25  ;;  %2260 = vst [vmem:[%s4626_s5 + $0xb0] sm:$0xff] %v2196_v56  ;;  %v2112_v4 = vadd.f32 %v4171_v6, %v1804_v45  ;;  %v2114_v35 = vadd.f32 %v4174_v61, %v1965_v46  ;;  %v1806_v38 = vpop.f32.mrb[141].mxu0  ;;  %v1967_v34 = vpop.f32.mrb[141].mxu1  ;;  %v4781_v45 = vld [vmem:[#allocation2_spill] sm:$0xff] }
 0x33e   :  { %2259 = vst [vmem:[%s4626_s5 + $0xa8] sm:$0xff] %v2195_v47  ;;  %2261 = vst [vmem:[%s4626_s5 + $0xb8] sm:$0xff] %v2197_v31  ;;  %v2113_v26 = vadd.f32 %v4177_v24, %v1806_v38  ;;  %v2115_v7 = vadd.f32 %v4180_v13, %v1967_v34 }
 0x33f   :  { %v2198_v39 = vadd.f32 %v4293_v8, %v2112_v4  ;;  %v2200_v6 = vadd.f32 %v4295_v44, %v2114_v35  ;;  %v4782_v4 = vld [vmem:[#allocation3_spill] sm:$0xff] }
 0x340   :  { %v2199_v61 = vadd.f32 %v4297_v58, %v2113_v26  ;;  %v2201_v11 = vadd.f32 %v4299_v32, %v2115_v7  ;;  %v1810_v37 = vpop.f32.mrb[142].mxu0  ;;  %v1971_v43 = vpop.f32.mrb[142].mxu1 }
 0x341   :  { %2262 = vst [vmem:[%s4626_s5 + $0xc0] sm:$0xff] %v2198_v39  ;;  %2264 = vst [vmem:[%s4626_s5 + $0xd0] sm:$0xff] %v2200_v6  ;;  %v2116_v24 = vadd.f32 %v4183_v15, %v1810_v37  ;;  %v2118_v13 = vadd.f32 %v4186_v9, %v1971_v43  ;;  %v1812_v51 = vpop.f32.mrb[143].mxu0  ;;  %v1973_v40 = vpop.f32.mrb[143].mxu1  ;;  %v4783_v39 = vld [vmem:[#allocation4_spill] sm:$0xff] }
 0x342   :  { %2263 = vst [vmem:[%s4626_s5 + $0xc8] sm:$0xff] %v2199_v61  ;;  %2265 = vst [vmem:[%s4626_s5 + $0xd8] sm:$0xff] %v2201_v11  ;;  %v2117_v5 = vadd.f32 %v4189_v3, %v1812_v51  ;;  %v2119_v12 = vadd.f32 %v4192_v21, %v1973_v40  ;;  %v4784_v61 = vld [vmem:[#allocation5_spill] sm:$0xff]  ;;  %v4786_v51 = vld [vmem:[#allocation7_spill] sm:$0xff] }
 0x343   :  { %v2202_v41 = vadd.f32 %v4293_v8, %v2116_v24  ;;  %v2204_v15 = vadd.f32 %v4295_v44, %v2118_v13  ;;  %v4785_v24 = vld [vmem:[#allocation6_spill] sm:$0xff] }
 0x344   :  { %v2203_v9 = vadd.f32 %v4297_v58, %v2117_v5  ;;  %v2205_v1 = vadd.f32 %v4299_v32, %v2119_v12  ;;  %v1816_v50 = vpop.f32.mrb[144].mxu0  ;;  %v1977_v55 = vpop.f32.mrb[144].mxu1 }
 0x345   :  { %2266 = vst [vmem:[%s4626_s5 + $0xe0] sm:$0xff] %v2202_v41  ;;  %2268 = vst [vmem:[%s4626_s5 + $0xf0] sm:$0xff] %v2204_v15  ;;  %v2120_v3 = vadd.f32 %v4195_v54, %v1816_v50  ;;  %v2122_v21 = vadd.f32 %v4198_v22, %v1977_v55  ;;  %v1818_v57 = vpop.f32.mrb[145].mxu0  ;;  %v1979_v10 = vpop.f32.mrb[145].mxu1  ;;  %v4787_v50 = vld [vmem:[#allocation8_spill] sm:$0xff] }
 0x346   :  { %2267 = vst [vmem:[%s4626_s5 + $0xe8] sm:$0xff] %v2203_v9  ;;  %2269 = vst [vmem:[%s4626_s5 + $0xf8] sm:$0xff] %v2205_v1  ;;  %v2121_v2 = vadd.f32 %v4201_v59, %v1818_v57  ;;  %v2123_v42 = vadd.f32 %v4204_v48, %v1979_v10 }
 0x347   :  { %v2206_v29 = vadd.f32 %v4293_v8, %v2120_v3  ;;  %v2208_v54 = vadd.f32 %v4295_v44, %v2122_v21  ;;  %v4788_v3 = vld [vmem:[#allocation9_spill] sm:$0xff] }
 0x348   :  { %v2207_v22 = vadd.f32 %v4297_v58, %v2121_v2  ;;  %v2209_v49 = vadd.f32 %v4299_v32, %v2123_v42  ;;  %v1822_v17 = vpop.f32.mrb[146].mxu0  ;;  %v1983_v19 = vpop.f32.mrb[146].mxu1  ;;  %v4789_v2 = vld [vmem:[#allocation10_spill] sm:$0xff] }
 0x349   :  { %2270 = vst [vmem:[%s4626_s5 + $0x100] sm:$0xff] %v2206_v29  ;;  %2272 = vst [vmem:[%s4626_s5 + $0x110] sm:$0xff] %v2208_v54  ;;  %v2124_v59 = vadd.f32 %v4207_v63, %v1822_v17  ;;  %v2126_v48 = vadd.f32 %v4210_v33, %v1983_v19  ;;  %v1824_v53 = vpop.f32.mrb[147].mxu0  ;;  %v1985_v0 = vpop.f32.mrb[147].mxu1  ;;  %v4790_v29 = vld [vmem:[#allocation11_spill] sm:$0xff] }
 0x34a   :  { %2271 = vst [vmem:[%s4626_s5 + $0x108] sm:$0xff] %v2207_v22  ;;  %2273 = vst [vmem:[%s4626_s5 + $0x118] sm:$0xff] %v2209_v49  ;;  %v2125_v30 = vadd.f32 %v4213_v14, %v1824_v53  ;;  %v2127_v23 = vadd.f32 %v4216_v16, %v1985_v0  ;;  %v4791_v53 = vld [vmem:[#allocation12_spill] sm:$0xff] }
 0x34b   :  { %v2210_v60 = vadd.f32 %v4293_v8, %v2124_v59  ;;  %v2212_v63 = vadd.f32 %v4295_v44, %v2126_v48 }
 0x34c   :  { %v2211_v33 = vadd.f32 %v4297_v58, %v2125_v30  ;;  %v2213_v62 = vadd.f32 %v4299_v32, %v2127_v23  ;;  %v1828_v25 = vpop.f32.mrb[148].mxu0  ;;  %v1989_v56 = vpop.f32.mrb[148].mxu1  ;;  %v4792_v30 = vld [vmem:[#allocation13_spill] sm:$0xff] }
 0x34d   :  { %2274 = vst [vmem:[%s4626_s5 + $0x120] sm:$0xff] %v2210_v60  ;;  %2276 = vst [vmem:[%s4626_s5 + $0x130] sm:$0xff] %v2212_v63  ;;  %v2128_v14 = vadd.f32 %v4219_v20, %v1828_v25  ;;  %v2130_v16 = vadd.f32 %v4222_v28, %v1989_v56  ;;  %v1830_v47 = vpop.f32.mrb[149].mxu0  ;;  %v1991_v31 = vpop.f32.mrb[149].mxu1  ;;  %v4794_v25 = vld [vmem:[#allocation15_spill] sm:$0xff] }
 0x34e   :  { %2275 = vst [vmem:[%s4626_s5 + $0x128] sm:$0xff] %v2211_v33  ;;  %2277 = vst [vmem:[%s4626_s5 + $0x138] sm:$0xff] %v2213_v62  ;;  %v2129_v46 = vadd.f32 %v4781_v45, %v1830_v47  ;;  %v2131_v35 = vadd.f32 %v4782_v4, %v1991_v31  ;;  %v4793_v33 = vld [vmem:[#allocation14_spill] sm:$0xff]  ;;  %v4795_v4 = vld [vmem:[#allocation16_spill] sm:$0xff] }
 0x34f   :  { %v2214_v38 = vadd.f32 %v4293_v8, %v2128_v14  ;;  %v2216_v20 = vadd.f32 %v4295_v44, %v2130_v16 }
 0x350   :  { %v2215_v28 = vadd.f32 %v4297_v58, %v2129_v46  ;;  %v2217_v34 = vadd.f32 %v4299_v32, %v2131_v35  ;;  %v1834_v26 = vpop.f32.mrb[150].mxu0  ;;  %v1995_v7 = vpop.f32.mrb[150].mxu1 }
 0x351   :  { %2278 = vst [vmem:[%s4626_s5 + $0x140] sm:$0xff] %v2214_v38  ;;  %2280 = vst [vmem:[%s4626_s5 + $0x150] sm:$0xff] %v2216_v20  ;;  %v2132_v6 = vadd.f32 %v4783_v39, %v1834_v26  ;;  %v2134_v11 = vadd.f32 %v4784_v61, %v1995_v7  ;;  %v1836_v37 = vpop.f32.mrb[151].mxu0  ;;  %v1997_v43 = vpop.f32.mrb[151].mxu1  ;;  %v4796_v38 = vld [vmem:[#allocation17_spill] sm:$0xff]  ;;  %v4797_v26 = vld [vmem:[#allocation18_spill] sm:$0xff] }
 0x352   :  { %2279 = vst [vmem:[%s4626_s5 + $0x148] sm:$0xff] %v2215_v28  ;;  %2281 = vst [vmem:[%s4626_s5 + $0x158] sm:$0xff] %v2217_v34  ;;  %v2133_v13 = vadd.f32 %v4785_v24, %v1836_v37  ;;  %v2135_v40 = vadd.f32 %v4786_v51, %v1997_v43  ;;  %v4798_v39 = vld [vmem:[#allocation19_spill] sm:$0xff] }
 0x353   :  { %v2218_v5 = vadd.f32 %v4293_v8, %v2132_v6  ;;  %v2220_v12 = vadd.f32 %v4295_v44, %v2134_v11 }
 0x354   :  { %v2219_v41 = vadd.f32 %v4297_v58, %v2133_v13  ;;  %v2221_v15 = vadd.f32 %v4299_v32, %v2135_v40  ;;  %v1840_v9 = vpop.f32.mrb[152].mxu0  ;;  %v2001_v1 = vpop.f32.mrb[152].mxu1 }
 0x355   :  { %2282 = vst [vmem:[%s4626_s5 + $0x160] sm:$0xff] %v2218_v5  ;;  %2284 = vst [vmem:[%s4626_s5 + $0x170] sm:$0xff] %v2220_v12  ;;  %v2136_v55 = vadd.f32 %v4787_v50, %v1840_v9  ;;  %v2138_v21 = vadd.f32 %v4788_v3, %v2001_v1  ;;  %v1842_v57 = vpop.f32.mrb[153].mxu0  ;;  %v2003_v10 = vpop.f32.mrb[153].mxu1 }
 0x356   :  { %2283 = vst [vmem:[%s4626_s5 + $0x168] sm:$0xff] %v2219_v41  ;;  %2285 = vst [vmem:[%s4626_s5 + $0x178] sm:$0xff] %v2221_v15  ;;  %v2137_v42 = vadd.f32 %v4789_v2, %v1842_v57  ;;  %v2139_v54 = vadd.f32 %v4790_v29, %v2003_v10 }
 0x357   :  { %v2222_v22 = vadd.f32 %v4293_v8, %v2136_v55  ;;  %v2224_v49 = vadd.f32 %v4295_v44, %v2138_v21 }
 0x358   :  { %v2223_v17 = vadd.f32 %v4297_v58, %v2137_v42  ;;  %v2225_v19 = vadd.f32 %v4299_v32, %v2139_v54  ;;  %v1846_v59 = vpop.f32.mrb[154].mxu0  ;;  %v2007_v48 = vpop.f32.mrb[154].mxu1 }
 0x359   :  { %2286 = vst [vmem:[%s4626_s5 + $0x180] sm:$0xff] %v2222_v22  ;;  %2288 = vst [vmem:[%s4626_s5 + $0x190] sm:$0xff] %v2224_v49  ;;  %v2140_v0 = vadd.f32 %v4791_v53, %v1846_v59  ;;  %v2142_v23 = vadd.f32 %v4792_v30, %v2007_v48  ;;  %v1848_v60 = vpop.f32.mrb[155].mxu0  ;;  %v2009_v63 = vpop.f32.mrb[155].mxu1 }
 0x35a   :  { %2287 = vst [vmem:[%s4626_s5 + $0x188] sm:$0xff] %v2223_v17  ;;  %2289 = vst [vmem:[%s4626_s5 + $0x198] sm:$0xff] %v2225_v19  ;;  %v2141_v62 = vadd.f32 %v4793_v33, %v1848_v60  ;;  %v2143_v56 = vadd.f32 %v4794_v25, %v2009_v63 }
 0x35b   :  { %v2226_v14 = vadd.f32 %v4293_v8, %v2140_v0  ;;  %v2228_v16 = vadd.f32 %v4295_v44, %v2142_v23 }
 0x35c   :  { %v2227_v47 = vadd.f32 %v4297_v58, %v2141_v62  ;;  %v2229_v31 = vadd.f32 %v4299_v32, %v2143_v56  ;;  %v1852_v45 = vpop.f32.mrb[156].mxu0  ;;  %v2013_v46 = vpop.f32.mrb[156].mxu1 }
 0x35d   :  { %2290 = vst [vmem:[%s4626_s5 + $0x1a0] sm:$0xff] %v2226_v14  ;;  %2292 = vst [vmem:[%s4626_s5 + $0x1b0] sm:$0xff] %v2228_v16  ;;  %v2144_v35 = vadd.f32 %v4795_v4, %v1852_v45  ;;  %v2146_v20 = vadd.f32 %v4796_v38, %v2013_v46  ;;  %v1854_v28 = vpop.f32.mrb[157].mxu0  ;;  %v2015_v34 = vpop.f32.mrb[157].mxu1 }
 0x35e   :  { %2291 = vst [vmem:[%s4626_s5 + $0x1a8] sm:$0xff] %v2227_v47  ;;  %2293 = vst [vmem:[%s4626_s5 + $0x1b8] sm:$0xff] %v2229_v31  ;;  %v2145_v7 = vadd.f32 %v4797_v26, %v1854_v28  ;;  %v2147_v6 = vadd.f32 %v4798_v39, %v2015_v34 }
 0x35f   :  { %v2230_v61 = vadd.f32 %v4293_v8, %v2144_v35  ;;  %v2232_v11 = vadd.f32 %v4295_v44, %v2146_v20 }
 0x360   :  { %v2231_v37 = vadd.f32 %v4297_v58, %v2145_v7  ;;  %v2233_v43 = vadd.f32 %v4299_v32, %v2147_v6  ;;  %v1858_v24 = vpop.f32.mrb[158].mxu0  ;;  %v2019_v13 = vpop.f32.mrb[158].mxu1 }
 0x361   :  { %2294 = vst [vmem:[%s4626_s5 + $0x1c0] sm:$0xff] %v2230_v61  ;;  %2296 = vst [vmem:[%s4626_s5 + $0x1d0] sm:$0xff] %v2232_v11  ;;  %v2148_v51 = vadd.f32 %v4282_v36, %v1858_v24  ;;  %v2150_v40 = vadd.f32 %v4285_v27, %v2019_v13  ;;  %v1860_v5 = vpop.f32.mrb[159].mxu0  ;;  %v2021_v12 = vpop.f32.mrb[159].mxu1 }
 0x362   :  { %2295 = vst [vmem:[%s4626_s5 + $0x1c8] sm:$0xff] %v2231_v37  ;;  %2297 = vst [vmem:[%s4626_s5 + $0x1d8] sm:$0xff] %v2233_v43  ;;  %v2149_v41 = vadd.f32 %v4288_v52, %v1860_v5  ;;  %v2151_v15 = vadd.f32 %v4291_v18, %v2021_v12 }
 0x363   :  { %v2234_v9 = vadd.f32 %v4293_v8, %v2148_v51  ;;  %v2236_v36 = vadd.f32 %v4295_v44, %v2150_v40 }
 0x364   :  { %v2235_v27 = vadd.f32 %v4297_v58, %v2149_v41  ;;  %v2237_v1 = vadd.f32 %v4299_v32, %v2151_v15 }
 0x365   :  { %2298 = vst [vmem:[%s4626_s5 + $0x1e0] sm:$0xff] %v2234_v9  ;;  %2300 = vst [vmem:[%s4626_s5 + $0x1f0] sm:$0xff] %v2236_v36 }
 0x366   :  { %2299 = vst [vmem:[%s4626_s5 + $0x1e8] sm:$0xff] %v2235_v27  ;;  %2301 = vst [vmem:[%s4626_s5 + $0x1f8] sm:$0xff] %v2237_v1 }

</bundles_post_ra>
